<compile_context>
chip_gen: v7x
topology: tpu7x:2x2x1
jax: 0.10.0
libtpu: 0.0.40
codegen_flags: <defaults>
</compile_context>

<pallas_src>
import numpy as np
import jax
import jax.numpy as jnp
from jax import lax
from jax.experimental import pallas as pl
from jax.experimental.pallas import tpu as pltpu

NF = 8            # nf (default of Net)
N_LAYERS = 4      # n_layers
H_STEP = 0.5      # per-layer step = t_end / n_layers = (0.5 * 4) / 4
HW = 28
P = HW * HW       # 784
D_FC = NF * P     # 6272
N_CLASSES = 10
KTAPS = 9         # 3x3 conv taps


# ----------------------------- fused forward kernel (per batch element) -----------------------------
def fused_net_kernel(cols_ref, cw_ref, cb_ref, kT_ref, bcol_ref, jk_ref,
                     fcw_ref, fcb_ref, o_ref):
    # cols_ref: VMEM (1, 9, 784)        im2col of the zero-padded input image
    # cw_ref  : VMEM (NF, 9)            conv weights (k = kh*3 + kw)
    # cb_ref  : VMEM (NF, 1)            conv bias as a column
    # kT_ref  : VMEM (L, NF, NF)        K_l^T
    # bcol_ref: VMEM (L, NF, 1)         Hamiltonian bias as a column
    # jk_ref  : VMEM (L, NF, NF)        J @ K_l
    # fcw_ref : VMEM (NF, 10, 784)      fc_end weight, channel-major, lane-dense
    # fcb_ref : VMEM (1, 10)            fc_end bias
    # o_ref   : VMEM (1, 1, 10)         log-probs for this sample

    # conv1 as one MXU matmul -> X (NF, 784), channel-major
    x = jnp.dot(cw_ref[...], cols_ref[0],
                preferred_element_type=jnp.float32) + cb_ref[...]

    # Hamiltonian H1 / J1:  X += h * (J K_l) tanh(K_l^T X + b_l)
    for l in range(N_LAYERS):
        z = jnp.tanh(jnp.dot(kT_ref[l], x, preferred_element_type=jnp.float32)
                     + bcol_ref[l])
        x = x + H_STEP * jnp.dot(jk_ref[l], z, preferred_element_type=jnp.float32)

    # fc_end: logits[c] = fc_b[c] + sum_{oc} <X[oc, :], fc_w[c, oc*784:(oc+1)*784]>
    logits = fcb_ref[...]                                    # (1, 10)
    for oc in range(NF):
        logits = logits + lax.dot_general(
            x[oc:oc + 1, :], fcw_ref[oc],                    # (1,784) . (10,784)^T
            dimension_numbers=(((1,), (1,)), ((), ())),
            preferred_element_type=jnp.float32)              # -> (1, 10)

    # log_softmax
    m = jnp.max(logits, axis=-1, keepdims=True)
    lse = jnp.log(jnp.sum(jnp.exp(logits - m), axis=-1, keepdims=True)) + m
    o_ref[0] = logits - lse


def fused_net(cols, conv_w_flat, conv_b_col, kT, b_col, jk, fcw_t, fcb):
    B = cols.shape[0]
    out = pl.pallas_call(
        fused_net_kernel,
        out_shape=jax.ShapeDtypeStruct((B, 1, N_CLASSES), jnp.float32),
        grid=(B,),
        in_specs=[
            pl.BlockSpec((1, KTAPS, P), lambda i: (i, 0, 0)),            # im2col (per sample)
            pl.BlockSpec((NF, KTAPS), lambda i: (0, 0)),                 # conv w   (resident)
            pl.BlockSpec((NF, 1), lambda i: (0, 0)),                     # conv b   (resident)
            pl.BlockSpec((N_LAYERS, NF, NF), lambda i: (0, 0, 0)),       # K^T      (resident)
            pl.BlockSpec((N_LAYERS, NF, 1), lambda i: (0, 0, 0)),        # b^T      (resident)
            pl.BlockSpec((N_LAYERS, NF, NF), lambda i: (0, 0, 0)),       # J@K      (resident)
            pl.BlockSpec((NF, N_CLASSES, P), lambda i: (0, 0, 0)),       # fc w     (resident)
            pl.BlockSpec((1, N_CLASSES), lambda i: (0, 0)),              # fc b     (resident)
        ],
        out_specs=pl.BlockSpec((1, 1, N_CLASSES), lambda i: (i, 0, 0)),
        compiler_params=pltpu.CompilerParams(
            dimension_semantics=("parallel",),   # v7x: both TensorCores take batch slices
        ),
    )(cols, conv_w_flat, conv_b_col, kT, b_col, jk, fcw_t, fcb)
    return out[:, 0, :]


# ----------------------------- full Net.forward -----------------------------
def net_forward(x, conv_w, conv_b, K, b_ham, J, fc_w, fc_b):
    B = x.shape[0]
    # wrapper glue (pure layout): pad + im2col -> (B, 9, 784), k = kh*3 + kw
    xp = jnp.pad(x[:, 0], ((0, 0), (1, 1), (1, 1)))                       # (B, 30, 30)
    cols = jnp.stack([xp[:, kh:kh + HW, kw:kw + HW].reshape(B, P)
                      for kh in range(3) for kw in range(3)], axis=1)     # (B, 9, 784)

    # tiny parameter preprocessing (channel-major formulation)
    conv_w_flat = conv_w.reshape(NF, KTAPS)                               # (NF, 9)
    conv_b_col = conv_b.reshape(NF, 1)                                    # (NF, 1)
    kT = jnp.transpose(K, (0, 2, 1))                                      # (L, NF, NF)  K_l^T
    b_col = jnp.transpose(b_ham, (0, 2, 1))                               # (L, NF, 1)
    jk = jnp.einsum('ij,ljk->lik', J, K)                                  # (L, NF, NF)  J @ K_l
    fcw_t = jnp.transpose(fc_w.reshape(N_CLASSES, NF, P), (1, 0, 2))      # (NF, 10, 784)
    fcb = fc_b.reshape(1, N_CLASSES)                                      # (1, 10)

    return fused_net(cols, conv_w_flat, conv_b_col, kT, b_col, jk, fcw_t, fcb)  # (B, 10)


net_forward_jit = jax.jit(net_forward)


# ----------------------------- pure-JAX reference (for sanity check) -----------------------------
def reference_forward(x, conv_w, conv_b, K, b_ham, J, fc_w, fc_b):
    B = x.shape[0]
    conv = jax.lax.conv_general_dilated(
        x, conv_w, window_strides=(1, 1), padding=((1, 1), (1, 1)),
        dimension_numbers=('NCHW', 'OIHW', 'NCHW')) + conv_b[None, :, None, None]
    y = conv.reshape(B, NF, P).transpose(0, 2, 1)
    for l in range(N_LAYERS):
        z = jnp.tanh(y @ K[l] + b_ham[l, 0])
        y = y + H_STEP * z @ (J @ K[l]).T
    flat = y.transpose(0, 2, 1).reshape(B, D_FC)
    logits = flat @ fc_w.T + fc_b
    return jax.nn.log_softmax(logits, axis=1)


if __name__ == "__main__":
    key = jax.random.PRNGKey(0)
    ks = jax.random.split(key, 7)
    B = 2

    # input, NCHW like PyTorch FashionMNIST
    x = jax.random.normal(ks[0], (B, 1, HW, HW), dtype=jnp.float32)

    # deterministic synthetic parameters (shapes from Net.__init__ / H1.__init__)
    conv_w = 0.1 * jax.random.normal(ks[1], (NF, 1, 3, 3), dtype=jnp.float32)
    conv_b = 0.1 * jax.random.normal(ks[2], (NF,), dtype=jnp.float32)
    K = 0.5 * jax.random.normal(ks[3], (N_LAYERS, NF, NF), dtype=jnp.float32)      # K[l] == K_pt[:, :, l]
    b_ham = 0.5 * jax.random.normal(ks[4], (N_LAYERS, 1, NF), dtype=jnp.float32)   # b[l, 0] == b_pt[:, 0, l]
    half = NF // 2
    eye = jnp.eye(half, dtype=jnp.float32)
    zer = jnp.zeros((half, half), dtype=jnp.float32)
    J = jnp.block([[zer, -eye], [eye, zer]])                                       # J1
    fc_w = 0.02 * jax.random.normal(ks[5], (N_CLASSES, D_FC), dtype=jnp.float32)
    fc_b = 0.02 * jax.random.normal(ks[6], (N_CLASSES,), dtype=jnp.float32)

    out = net_forward_jit(x, conv_w, conv_b, K, b_ham, J, fc_w, fc_b)
    out = jax.block_until_ready(out)

    ref = reference_forward(x, conv_w, conv_b, K, b_ham, J, fc_w, fc_b)
    np.testing.assert_allclose(np.asarray(out), np.asarray(ref), atol=5e-2, rtol=0)
    assert out.shape == (B, N_CLASSES)
    assert bool(jnp.all(jnp.isfinite(out)))
    print("KERNEL_OK")
</pallas_src>

<mosaic_0001>
module attributes {stable_mosaic.version = 11 : i64} {
  func.func @fused_net_kernel(%arg0: i32, %arg1: memref<1x9x784xf32, #tpu.memory_space<vmem>>, %arg2: memref<8x9xf32, #tpu.memory_space<vmem>>, %arg3: memref<8x1xf32, #tpu.memory_space<vmem>>, %arg4: memref<4x8x8xf32, #tpu.memory_space<vmem>>, %arg5: memref<4x8x1xf32, #tpu.memory_space<vmem>>, %arg6: memref<4x8x8xf32, #tpu.memory_space<vmem>>, %arg7: memref<8x10x784xf32, #tpu.memory_space<vmem>>, %arg8: memref<1x10xf32, #tpu.memory_space<vmem>>, %arg9: memref<1x1x10xf32, #tpu.memory_space<vmem>>) attributes {dimension_semantics = [#tpu.dimension_semantics<parallel>], iteration_bounds = array<i64: 2>, scalar_prefetch = 0 : i64, scratch_operands = 0 : i64, tpu.core_type = #tpu.core_type<tc>, window_params = [{transform_indices = @transform_0, window_bounds = array<i64: 1, 9, 784>}, {pipeline_mode = #tpu.pipeline_mode<synchronous>, transform_indices = @transform_1, window_bounds = array<i64: 8, 9>}, {pipeline_mode = #tpu.pipeline_mode<synchronous>, transform_indices = @transform_2, window_bounds = array<i64: 8, 1>}, {pipeline_mode = #tpu.pipeline_mode<synchronous>, transform_indices = @transform_3, window_bounds = array<i64: 4, 8, 8>}, {pipeline_mode = #tpu.pipeline_mode<synchronous>, transform_indices = @transform_4, window_bounds = array<i64: 4, 8, 1>}, {pipeline_mode = #tpu.pipeline_mode<synchronous>, transform_indices = @transform_5, window_bounds = array<i64: 4, 8, 8>}, {pipeline_mode = #tpu.pipeline_mode<synchronous>, transform_indices = @transform_6, window_bounds = array<i64: 8, 10, 784>}, {pipeline_mode = #tpu.pipeline_mode<synchronous>, transform_indices = @transform_7, window_bounds = array<i64: 1, 10>}, {transform_indices = @transform_8, window_bounds = array<i64: 1, 1, 10>}]} {
    %c0 = arith.constant 0 : index
    %c0_0 = arith.constant 0 : index
    %0 = vector.load %arg2[%c0, %c0_0] : memref<8x9xf32, #tpu.memory_space<vmem>>, vector<8x9xf32>
    %c0_1 = arith.constant 0 : index
    %c0_2 = arith.constant 0 : index
    %c0_3 = arith.constant 0 : index
    %1 = vector.load %arg1[%c0_1, %c0_2, %c0_3] : memref<1x9x784xf32, #tpu.memory_space<vmem>>, vector<1x9x784xf32>
    %2 = vector.shape_cast %1 : vector<1x9x784xf32> to vector<9x784xf32>
    %cst = arith.constant dense<0.000000e+00> : vector<8x784xf32>
    %3 = tpu.matmul %0, %2, %cst {dimension_numbers = #tpu.dot_dimension_numbers<[1], [0], [0], [1], [0, 0, 1, 1], [], []>} : vector<8x9xf32>, vector<9x784xf32>, vector<8x784xf32> -> vector<8x784xf32>
    %c0_4 = arith.constant 0 : index
    %c0_5 = arith.constant 0 : index
    %4 = vector.load %arg3[%c0_4, %c0_5] : memref<8x1xf32, #tpu.memory_space<vmem>>, vector<8x1xf32>
    %5 = vector.broadcast %4 : vector<8x1xf32> to vector<8x784xf32>
    %6 = arith.addf %3, %5 : vector<8x784xf32>
    %c0_6 = arith.constant 0 : index
    %c0_7 = arith.constant 0 : index
    %c0_8 = arith.constant 0 : index
    %7 = vector.load %arg4[%c0_6, %c0_7, %c0_8] : memref<4x8x8xf32, #tpu.memory_space<vmem>>, vector<1x8x8xf32>
    %8 = vector.shape_cast %7 : vector<1x8x8xf32> to vector<8x8xf32>
    %cst_9 = arith.constant dense<0.000000e+00> : vector<8x784xf32>
    %9 = tpu.matmul %8, %6, %cst_9 {dimension_numbers = #tpu.dot_dimension_numbers<[1], [0], [0], [1], [0, 0, 1, 1], [], []>} : vector<8x8xf32>, vector<8x784xf32>, vector<8x784xf32> -> vector<8x784xf32>
    %c0_10 = arith.constant 0 : index
    %c0_11 = arith.constant 0 : index
    %c0_12 = arith.constant 0 : index
    %10 = vector.load %arg5[%c0_10, %c0_11, %c0_12] : memref<4x8x1xf32, #tpu.memory_space<vmem>>, vector<1x8x1xf32>
    %11 = vector.shape_cast %10 : vector<1x8x1xf32> to vector<8x1xf32>
    %12 = vector.broadcast %11 : vector<8x1xf32> to vector<8x784xf32>
    %13 = arith.addf %9, %12 : vector<8x784xf32>
    %14 = math.tanh %13 : vector<8x784xf32>
    %c0_13 = arith.constant 0 : index
    %c0_14 = arith.constant 0 : index
    %c0_15 = arith.constant 0 : index
    %15 = vector.load %arg6[%c0_13, %c0_14, %c0_15] : memref<4x8x8xf32, #tpu.memory_space<vmem>>, vector<1x8x8xf32>
    %16 = vector.shape_cast %15 : vector<1x8x8xf32> to vector<8x8xf32>
    %cst_16 = arith.constant dense<0.000000e+00> : vector<8x784xf32>
    %17 = tpu.matmul %16, %14, %cst_16 {dimension_numbers = #tpu.dot_dimension_numbers<[1], [0], [0], [1], [0, 0, 1, 1], [], []>} : vector<8x8xf32>, vector<8x784xf32>, vector<8x784xf32> -> vector<8x784xf32>
    %cst_17 = arith.constant 5.000000e-01 : f32
    %18 = vector.broadcast %cst_17 : f32 to vector<8x784xf32>
    %19 = arith.mulf %18, %17 : vector<8x784xf32>
    %20 = arith.addf %6, %19 : vector<8x784xf32>
    %c1 = arith.constant 1 : index
    %c0_18 = arith.constant 0 : index
    %c0_19 = arith.constant 0 : index
    %21 = vector.load %arg4[%c1, %c0_18, %c0_19] : memref<4x8x8xf32, #tpu.memory_space<vmem>>, vector<1x8x8xf32>
    %22 = vector.shape_cast %21 : vector<1x8x8xf32> to vector<8x8xf32>
    %cst_20 = arith.constant dense<0.000000e+00> : vector<8x784xf32>
    %23 = tpu.matmul %22, %20, %cst_20 {dimension_numbers = #tpu.dot_dimension_numbers<[1], [0], [0], [1], [0, 0, 1, 1], [], []>} : vector<8x8xf32>, vector<8x784xf32>, vector<8x784xf32> -> vector<8x784xf32>
    %c1_21 = arith.constant 1 : index
    %c0_22 = arith.constant 0 : index
    %c0_23 = arith.constant 0 : index
    %24 = vector.load %arg5[%c1_21, %c0_22, %c0_23] : memref<4x8x1xf32, #tpu.memory_space<vmem>>, vector<1x8x1xf32>
    %25 = vector.shape_cast %24 : vector<1x8x1xf32> to vector<8x1xf32>
    %26 = vector.broadcast %25 : vector<8x1xf32> to vector<8x784xf32>
    %27 = arith.addf %23, %26 : vector<8x784xf32>
    %28 = math.tanh %27 : vector<8x784xf32>
    %c1_24 = arith.constant 1 : index
    %c0_25 = arith.constant 0 : index
    %c0_26 = arith.constant 0 : index
    %29 = vector.load %arg6[%c1_24, %c0_25, %c0_26] : memref<4x8x8xf32, #tpu.memory_space<vmem>>, vector<1x8x8xf32>
    %30 = vector.shape_cast %29 : vector<1x8x8xf32> to vector<8x8xf32>
    %cst_27 = arith.constant dense<0.000000e+00> : vector<8x784xf32>
    %31 = tpu.matmul %30, %28, %cst_27 {dimension_numbers = #tpu.dot_dimension_numbers<[1], [0], [0], [1], [0, 0, 1, 1], [], []>} : vector<8x8xf32>, vector<8x784xf32>, vector<8x784xf32> -> vector<8x784xf32>
    %cst_28 = arith.constant 5.000000e-01 : f32
    %32 = vector.broadcast %cst_28 : f32 to vector<8x784xf32>
    %33 = arith.mulf %32, %31 : vector<8x784xf32>
    %34 = arith.addf %20, %33 : vector<8x784xf32>
    %c2 = arith.constant 2 : index
    %c0_29 = arith.constant 0 : index
    %c0_30 = arith.constant 0 : index
    %35 = vector.load %arg4[%c2, %c0_29, %c0_30] : memref<4x8x8xf32, #tpu.memory_space<vmem>>, vector<1x8x8xf32>
    %36 = vector.shape_cast %35 : vector<1x8x8xf32> to vector<8x8xf32>
    %cst_31 = arith.constant dense<0.000000e+00> : vector<8x784xf32>
    %37 = tpu.matmul %36, %34, %cst_31 {dimension_numbers = #tpu.dot_dimension_numbers<[1], [0], [0], [1], [0, 0, 1, 1], [], []>} : vector<8x8xf32>, vector<8x784xf32>, vector<8x784xf32> -> vector<8x784xf32>
    %c2_32 = arith.constant 2 : index
    %c0_33 = arith.constant 0 : index
    %c0_34 = arith.constant 0 : index
    %38 = vector.load %arg5[%c2_32, %c0_33, %c0_34] : memref<4x8x1xf32, #tpu.memory_space<vmem>>, vector<1x8x1xf32>
    %39 = vector.shape_cast %38 : vector<1x8x1xf32> to vector<8x1xf32>
    %40 = vector.broadcast %39 : vector<8x1xf32> to vector<8x784xf32>
    %41 = arith.addf %37, %40 : vector<8x784xf32>
    %42 = math.tanh %41 : vector<8x784xf32>
    %c2_35 = arith.constant 2 : index
    %c0_36 = arith.constant 0 : index
    %c0_37 = arith.constant 0 : index
    %43 = vector.load %arg6[%c2_35, %c0_36, %c0_37] : memref<4x8x8xf32, #tpu.memory_space<vmem>>, vector<1x8x8xf32>
    %44 = vector.shape_cast %43 : vector<1x8x8xf32> to vector<8x8xf32>
    %cst_38 = arith.constant dense<0.000000e+00> : vector<8x784xf32>
    %45 = tpu.matmul %44, %42, %cst_38 {dimension_numbers = #tpu.dot_dimension_numbers<[1], [0], [0], [1], [0, 0, 1, 1], [], []>} : vector<8x8xf32>, vector<8x784xf32>, vector<8x784xf32> -> vector<8x784xf32>
    %cst_39 = arith.constant 5.000000e-01 : f32
    %46 = vector.broadcast %cst_39 : f32 to vector<8x784xf32>
    %47 = arith.mulf %46, %45 : vector<8x784xf32>
    %48 = arith.addf %34, %47 : vector<8x784xf32>
    %c3 = arith.constant 3 : index
    %c0_40 = arith.constant 0 : index
    %c0_41 = arith.constant 0 : index
    %49 = vector.load %arg4[%c3, %c0_40, %c0_41] : memref<4x8x8xf32, #tpu.memory_space<vmem>>, vector<1x8x8xf32>
    %50 = vector.shape_cast %49 : vector<1x8x8xf32> to vector<8x8xf32>
    %cst_42 = arith.constant dense<0.000000e+00> : vector<8x784xf32>
    %51 = tpu.matmul %50, %48, %cst_42 {dimension_numbers = #tpu.dot_dimension_numbers<[1], [0], [0], [1], [0, 0, 1, 1], [], []>} : vector<8x8xf32>, vector<8x784xf32>, vector<8x784xf32> -> vector<8x784xf32>
    %c3_43 = arith.constant 3 : index
    %c0_44 = arith.constant 0 : index
    %c0_45 = arith.constant 0 : index
    %52 = vector.load %arg5[%c3_43, %c0_44, %c0_45] : memref<4x8x1xf32, #tpu.memory_space<vmem>>, vector<1x8x1xf32>
    %53 = vector.shape_cast %52 : vector<1x8x1xf32> to vector<8x1xf32>
    %54 = vector.broadcast %53 : vector<8x1xf32> to vector<8x784xf32>
    %55 = arith.addf %51, %54 : vector<8x784xf32>
    %56 = math.tanh %55 : vector<8x784xf32>
    %c3_46 = arith.constant 3 : index
    %c0_47 = arith.constant 0 : index
    %c0_48 = arith.constant 0 : index
    %57 = vector.load %arg6[%c3_46, %c0_47, %c0_48] : memref<4x8x8xf32, #tpu.memory_space<vmem>>, vector<1x8x8xf32>
    %58 = vector.shape_cast %57 : vector<1x8x8xf32> to vector<8x8xf32>
    %cst_49 = arith.constant dense<0.000000e+00> : vector<8x784xf32>
    %59 = tpu.matmul %58, %56, %cst_49 {dimension_numbers = #tpu.dot_dimension_numbers<[1], [0], [0], [1], [0, 0, 1, 1], [], []>} : vector<8x8xf32>, vector<8x784xf32>, vector<8x784xf32> -> vector<8x784xf32>
    %cst_50 = arith.constant 5.000000e-01 : f32
    %60 = vector.broadcast %cst_50 : f32 to vector<8x784xf32>
    %61 = arith.mulf %60, %59 : vector<8x784xf32>
    %62 = arith.addf %48, %61 : vector<8x784xf32>
    %c0_51 = arith.constant 0 : index
    %c0_52 = arith.constant 0 : index
    %63 = vector.load %arg8[%c0_51, %c0_52] : memref<1x10xf32, #tpu.memory_space<vmem>>, vector<1x10xf32>
    %64 = vector.extract_strided_slice %62 {offsets = [0, 0], sizes = [1, 784], strides = [1, 1]} : vector<8x784xf32> to vector<1x784xf32>
    %c0_53 = arith.constant 0 : index
    %c0_54 = arith.constant 0 : index
    %c0_55 = arith.constant 0 : index
    %65 = vector.load %arg7[%c0_53, %c0_54, %c0_55] : memref<8x10x784xf32, #tpu.memory_space<vmem>>, vector<1x10x784xf32>
    %66 = vector.shape_cast %65 : vector<1x10x784xf32> to vector<10x784xf32>
    %cst_56 = arith.constant dense<0.000000e+00> : vector<1x10xf32>
    %67 = tpu.matmul %64, %66, %cst_56 {dimension_numbers = #tpu.dot_dimension_numbers<[1], [1], [0], [0], [0, 0, 1, 0], [], []>} : vector<1x784xf32>, vector<10x784xf32>, vector<1x10xf32> -> vector<1x10xf32>
    %68 = arith.addf %63, %67 : vector<1x10xf32>
    %69 = vector.extract_strided_slice %62 {offsets = [1, 0], sizes = [1, 784], strides = [1, 1]} : vector<8x784xf32> to vector<1x784xf32>
    %c1_57 = arith.constant 1 : index
    %c0_58 = arith.constant 0 : index
    %c0_59 = arith.constant 0 : index
    %70 = vector.load %arg7[%c1_57, %c0_58, %c0_59] : memref<8x10x784xf32, #tpu.memory_space<vmem>>, vector<1x10x784xf32>
    %71 = vector.shape_cast %70 : vector<1x10x784xf32> to vector<10x784xf32>
    %cst_60 = arith.constant dense<0.000000e+00> : vector<1x10xf32>
    %72 = tpu.matmul %69, %71, %cst_60 {dimension_numbers = #tpu.dot_dimension_numbers<[1], [1], [0], [0], [0, 0, 1, 0], [], []>} : vector<1x784xf32>, vector<10x784xf32>, vector<1x10xf32> -> vector<1x10xf32>
    %73 = arith.addf %68, %72 : vector<1x10xf32>
    %74 = vector.extract_strided_slice %62 {offsets = [2, 0], sizes = [1, 784], strides = [1, 1]} : vector<8x784xf32> to vector<1x784xf32>
    %c2_61 = arith.constant 2 : index
    %c0_62 = arith.constant 0 : index
    %c0_63 = arith.constant 0 : index
    %75 = vector.load %arg7[%c2_61, %c0_62, %c0_63] : memref<8x10x784xf32, #tpu.memory_space<vmem>>, vector<1x10x784xf32>
    %76 = vector.shape_cast %75 : vector<1x10x784xf32> to vector<10x784xf32>
    %cst_64 = arith.constant dense<0.000000e+00> : vector<1x10xf32>
    %77 = tpu.matmul %74, %76, %cst_64 {dimension_numbers = #tpu.dot_dimension_numbers<[1], [1], [0], [0], [0, 0, 1, 0], [], []>} : vector<1x784xf32>, vector<10x784xf32>, vector<1x10xf32> -> vector<1x10xf32>
    %78 = arith.addf %73, %77 : vector<1x10xf32>
    %79 = vector.extract_strided_slice %62 {offsets = [3, 0], sizes = [1, 784], strides = [1, 1]} : vector<8x784xf32> to vector<1x784xf32>
    %c3_65 = arith.constant 3 : index
    %c0_66 = arith.constant 0 : index
    %c0_67 = arith.constant 0 : index
    %80 = vector.load %arg7[%c3_65, %c0_66, %c0_67] : memref<8x10x784xf32, #tpu.memory_space<vmem>>, vector<1x10x784xf32>
    %81 = vector.shape_cast %80 : vector<1x10x784xf32> to vector<10x784xf32>
    %cst_68 = arith.constant dense<0.000000e+00> : vector<1x10xf32>
    %82 = tpu.matmul %79, %81, %cst_68 {dimension_numbers = #tpu.dot_dimension_numbers<[1], [1], [0], [0], [0, 0, 1, 0], [], []>} : vector<1x784xf32>, vector<10x784xf32>, vector<1x10xf32> -> vector<1x10xf32>
    %83 = arith.addf %78, %82 : vector<1x10xf32>
    %84 = vector.extract_strided_slice %62 {offsets = [4, 0], sizes = [1, 784], strides = [1, 1]} : vector<8x784xf32> to vector<1x784xf32>
    %c4 = arith.constant 4 : index
    %c0_69 = arith.constant 0 : index
    %c0_70 = arith.constant 0 : index
    %85 = vector.load %arg7[%c4, %c0_69, %c0_70] : memref<8x10x784xf32, #tpu.memory_space<vmem>>, vector<1x10x784xf32>
    %86 = vector.shape_cast %85 : vector<1x10x784xf32> to vector<10x784xf32>
    %cst_71 = arith.constant dense<0.000000e+00> : vector<1x10xf32>
    %87 = tpu.matmul %84, %86, %cst_71 {dimension_numbers = #tpu.dot_dimension_numbers<[1], [1], [0], [0], [0, 0, 1, 0], [], []>} : vector<1x784xf32>, vector<10x784xf32>, vector<1x10xf32> -> vector<1x10xf32>
    %88 = arith.addf %83, %87 : vector<1x10xf32>
    %89 = vector.extract_strided_slice %62 {offsets = [5, 0], sizes = [1, 784], strides = [1, 1]} : vector<8x784xf32> to vector<1x784xf32>
    %c5 = arith.constant 5 : index
    %c0_72 = arith.constant 0 : index
    %c0_73 = arith.constant 0 : index
    %90 = vector.load %arg7[%c5, %c0_72, %c0_73] : memref<8x10x784xf32, #tpu.memory_space<vmem>>, vector<1x10x784xf32>
    %91 = vector.shape_cast %90 : vector<1x10x784xf32> to vector<10x784xf32>
    %cst_74 = arith.constant dense<0.000000e+00> : vector<1x10xf32>
    %92 = tpu.matmul %89, %91, %cst_74 {dimension_numbers = #tpu.dot_dimension_numbers<[1], [1], [0], [0], [0, 0, 1, 0], [], []>} : vector<1x784xf32>, vector<10x784xf32>, vector<1x10xf32> -> vector<1x10xf32>
    %93 = arith.addf %88, %92 : vector<1x10xf32>
    %94 = vector.extract_strided_slice %62 {offsets = [6, 0], sizes = [1, 784], strides = [1, 1]} : vector<8x784xf32> to vector<1x784xf32>
    %c6 = arith.constant 6 : index
    %c0_75 = arith.constant 0 : index
    %c0_76 = arith.constant 0 : index
    %95 = vector.load %arg7[%c6, %c0_75, %c0_76] : memref<8x10x784xf32, #tpu.memory_space<vmem>>, vector<1x10x784xf32>
    %96 = vector.shape_cast %95 : vector<1x10x784xf32> to vector<10x784xf32>
    %cst_77 = arith.constant dense<0.000000e+00> : vector<1x10xf32>
    %97 = tpu.matmul %94, %96, %cst_77 {dimension_numbers = #tpu.dot_dimension_numbers<[1], [1], [0], [0], [0, 0, 1, 0], [], []>} : vector<1x784xf32>, vector<10x784xf32>, vector<1x10xf32> -> vector<1x10xf32>
    %98 = arith.addf %93, %97 : vector<1x10xf32>
    %99 = vector.extract_strided_slice %62 {offsets = [7, 0], sizes = [1, 784], strides = [1, 1]} : vector<8x784xf32> to vector<1x784xf32>
    %c7 = arith.constant 7 : index
    %c0_78 = arith.constant 0 : index
    %c0_79 = arith.constant 0 : index
    %100 = vector.load %arg7[%c7, %c0_78, %c0_79] : memref<8x10x784xf32, #tpu.memory_space<vmem>>, vector<1x10x784xf32>
    %101 = vector.shape_cast %100 : vector<1x10x784xf32> to vector<10x784xf32>
    %cst_80 = arith.constant dense<0.000000e+00> : vector<1x10xf32>
    %102 = tpu.matmul %99, %101, %cst_80 {dimension_numbers = #tpu.dot_dimension_numbers<[1], [1], [0], [0], [0, 0, 1, 0], [], []>} : vector<1x784xf32>, vector<10x784xf32>, vector<1x10xf32> -> vector<1x10xf32>
    %103 = arith.addf %98, %102 : vector<1x10xf32>
    %cst_81 = arith.constant dense<0xFF800000> : vector<1xf32>
    %104 = vector.multi_reduction <maximumf>, %103, %cst_81 [1] : vector<1x10xf32> to vector<1xf32>
    %105 = vector.shape_cast %104 : vector<1xf32> to vector<1x1xf32>
    %106 = vector.broadcast %105 : vector<1x1xf32> to vector<1x10xf32>
    %107 = arith.subf %103, %106 : vector<1x10xf32>
    %108 = math.exp %107 : vector<1x10xf32>
    %cst_82 = arith.constant dense<0.000000e+00> : vector<1xf32>
    %109 = vector.multi_reduction <add>, %108, %cst_82 [1] : vector<1x10xf32> to vector<1xf32>
    %110 = vector.shape_cast %109 : vector<1xf32> to vector<1x1xf32>
    %111 = math.log %110 : vector<1x1xf32>
    %112 = arith.addf %111, %105 : vector<1x1xf32>
    %113 = vector.broadcast %112 : vector<1x1xf32> to vector<1x10xf32>
    %114 = arith.subf %103, %113 : vector<1x10xf32>
    %c0_83 = arith.constant 0 : index
    %c0_84 = arith.constant 0 : index
    %c0_85 = arith.constant 0 : index
    %115 = vector.load %arg9[%c0_83, %c0_84, %c0_85] : memref<1x1x10xf32, #tpu.memory_space<vmem>>, vector<1x1x10xf32>
    %116 = vector.shape_cast %115 : vector<1x1x10xf32> to vector<1x10xf32>
    %117 = vector.shape_cast %114 : vector<1x10xf32> to vector<1x1x10xf32>
    tpu.vector_store %arg9[%c0_83, %c0_84, %c0_85], %117 {strides = array<i32>} : memref<1x1x10xf32, #tpu.memory_space<vmem>>, vector<1x1x10xf32>,
    return
  }
  func.func @transform_0(%arg0: i32) -> (i32, i32, i32) {
    %c0_i32 = arith.constant 0 : i32
    %c0_i32_0 = arith.constant 0 : i32
    %c0_i32_1 = arith.constant 0 : i32
    return %arg0, %c0_i32, %c0_i32_0 : i32, i32, i32
  }
  func.func @transform_1(%arg0: i32) -> (i32, i32) {
    %c0_i32 = arith.constant 0 : i32
    %c0_i32_0 = arith.constant 0 : i32
    %c0_i32_1 = arith.constant 0 : i32
    return %c0_i32, %c0_i32_0 : i32, i32
  }
  func.func @transform_2(%arg0: i32) -> (i32, i32) {
    %c0_i32 = arith.constant 0 : i32
    %c0_i32_0 = arith.constant 0 : i32
    %c0_i32_1 = arith.constant 0 : i32
    return %c0_i32, %c0_i32_0 : i32, i32
  }
  func.func @transform_3(%arg0: i32) -> (i32, i32, i32) {
    %c0_i32 = arith.constant 0 : i32
    %c0_i32_0 = arith.constant 0 : i32
    %c0_i32_1 = arith.constant 0 : i32
    %c0_i32_2 = arith.constant 0 : i32
    return %c0_i32, %c0_i32_0, %c0_i32_1 : i32, i32, i32
  }
  func.func @transform_4(%arg0: i32) -> (i32, i32, i32) {
    %c0_i32 = arith.constant 0 : i32
    %c0_i32_0 = arith.constant 0 : i32
    %c0_i32_1 = arith.constant 0 : i32
    %c0_i32_2 = arith.constant 0 : i32
    return %c0_i32, %c0_i32_0, %c0_i32_1 : i32, i32, i32
  }
  func.func @transform_5(%arg0: i32) -> (i32, i32, i32) {
    %c0_i32 = arith.constant 0 : i32
    %c0_i32_0 = arith.constant 0 : i32
    %c0_i32_1 = arith.constant 0 : i32
    %c0_i32_2 = arith.constant 0 : i32
    return %c0_i32, %c0_i32_0, %c0_i32_1 : i32, i32, i32
  }
  func.func @transform_6(%arg0: i32) -> (i32, i32, i32) {
    %c0_i32 = arith.constant 0 : i32
    %c0_i32_0 = arith.constant 0 : i32
    %c0_i32_1 = arith.constant 0 : i32
    %c0_i32_2 = arith.constant 0 : i32
    return %c0_i32, %c0_i32_0, %c0_i32_1 : i32, i32, i32
  }
  func.func @transform_7(%arg0: i32) -> (i32, i32) {
    %c0_i32 = arith.constant 0 : i32
    %c0_i32_0 = arith.constant 0 : i32
    %c0_i32_1 = arith.constant 0 : i32
    return %c0_i32, %c0_i32_0 : i32, i32
  }
  func.func @transform_8(%arg0: i32) -> (i32, i32, i32) {
    %c0_i32 = arith.constant 0 : i32
    %c0_i32_0 = arith.constant 0 : i32
    %c0_i32_1 = arith.constant 0 : i32
    return %arg0, %c0_i32, %c0_i32_0 : i32, i32, i32
  }
}

</mosaic_0001>

<bundles_post_ra>
// kernel: net_forward.1
= control target key start
LH: loop header
LB: loop body
LE: loop exit
PB: predicated region body
PF: predicated region fallthrough
CT: control target
= control target key end

     0   :  { %13 = vsyncpa [#allocation3], 0  ;;  %s7251_s0 = inlined_call_operand.vmem [shape: f32[2,9,784], index: 0, kind: input, shape index: {}]   ;;  %s7252_s1 = inlined_call_operand.vmem [shape: f32[8,9], index: 1, kind: input, shape index: {}]   ;;  %s7253_s2 = inlined_call_operand.vmem [shape: f32[8,1], index: 2, kind: input, shape index: {}]   ;;  %s7254_s3 = inlined_call_operand.vmem [shape: f32[4,8,8], index: 3, kind: input, shape index: {}]   ;;  %s7255_s4 = inlined_call_operand.vmem [shape: f32[4,8,1], index: 4, kind: input, shape index: {}]   ;;  %s7256_s5 = inlined_call_operand.vmem [shape: f32[4,8,8], index: 5, kind: input, shape index: {}]   ;;  %s7257_s6 = inlined_call_operand.vmem [shape: f32[8,10,784], index: 6, kind: input, shape index: {}]   ;;  %s7258_s7 = inlined_call_operand.vmem [shape: f32[1,10], index: 7, kind: input, shape index: {}]   ;;  %s7259_s8 = inlined_call_operand.hbm [shape: f32[2,1,10], index: 8, kind: output, shape index: {}]  }
   0x1   :  { %15 = vsyncpa [#allocation3 + $0x1], 0  ;;  %s6423_s27 = smov 0   ;;  %s6425_s28 = smov 0  }
   0x2   :  { %s6427_s29 = smov 0   ;;  %s6429_s30 = smov 0  }
   0x3 LB: > { %s6444_s9 = sadd.s32 4294967295, %s6370_s30   ;;  %s5661_s10 = sadd.s32 4294967294, %s6370_s30   ;;  %s6370_s30 = sphi %s6429_s30, %s7269_s30   ;;  %s6366_s29 = sphi %s6427_s29, %s7268_s29   ;;  %s6362_s28 = sphi %s6425_s28, %s7267_s28   ;;  %s6358_s27 = sphi %s6423_s27, %s7266_s27  }
   0x4   : > { %s6448_s11 = sadd.s32 1, %s6370_s30   ;;  %s201_s12 = sadd.s32 1, %s6366_s29 }
   0x5   : > { %s198_s13 = ssub.s32 %s6370_s30, %s6448_s11  ;;  %p211_p0 = scmp.ne.s32.totalorder %s6366_s29, %s6362_s28 }
   0x6   : > { %p199_p1 = scmp.eq.s32.totalorder %s198_s13, 0  ;;  %p212_p2 = scmp.eq.s32.totalorder %s6444_s9, 1 }
   0x7   : > { %p217_p3 = scmp.ne.s32.totalorder %s6362_s28, %s6358_s27  ;;  %p218_p4 = scmp.eq.s32.totalorder %s5661_s10, 1 }
   0x8   : > { %s6459_s14 = scalar_select %p199_p1, %s6366_s29, %s201_s12  }
   0x9   : > { %p6461_p5 = por %p212_p2, %p211_p0  ;;  %p6465_p6 = por %p218_p4, %p217_p3 }
   0xa   : > { %p5664_p7 = scmp.ge.s32.totalorder %s6370_s30, 1  ;;  %p265_p8 = scmp.lt.s32.totalorder %s6370_s30, 3 }
   0xc   : > { %p266_p9 = pnand %p5664_p7, %p265_p8 }
   0xd   : > { %p298_p10 = scmp.lt.s32.totalorder (!%p266_p9), %s6444_s9, 1  ;;  %v6372_v0 = vmov (!%p266_p9), 0.0   ;;  %v318_v1 = vld [vmem:[%s7253_s2] sm:$0xff] (!%p266_p9)  ;;  %v6373_v2 = vmov (!%p266_p9), 0   ;;  %vm328_vm0 = vcmask (!%p266_p9), 1040384   ;;  %vm6374_vm1 = vmmov (!%p266_p9), 1  }
   0xe   : > { %269 = sbr.rel (%p266_p9) target bundleno = 2707 (0xa93), region = 52  ;;  %414 = vmatprep.mubr.f32.mxu0 (!%p266_p9), %v6372_v0  ;;  %485 = vmatprep.mubr.f32.mxu1 (!%p266_p9), %v6372_v0  ;;  %v634_v3 = vld [vmem:[%s7255_s4] sm:$0xff] (!%p266_p9)  ;;  %vm6484_vm2 = vmpackc.low (!%p266_p9), %vm328_vm0, %vm6374_vm1  ;;  %v5708_v8 = vld [vmem:[%s7255_s4 + $0x18] sm:$0xff] (!%p266_p9)  ;;  %vm324_vm3 = vcmask (!%p266_p9), 72704   ;;  %v6375_v28 = vmov (!%p266_p9), 0.0|0.0   ;;  %vm6376_vm4 = vmmov (!%p266_p9), 0  }
   0xf   : > { %6246 = vset.pattern.permute.xlu0 (!%p266_p9), %v6373_v2  ;;  %6247 = vset.pattern.permute.xlu1 (!%p266_p9), %v6373_v2  ;;  %v303_v22 = vld [vmem:[%s7252_s1] sm:$0xff] (!%p266_p9)  ;;  %vm640_vm5 = vcmask (!%p266_p9), 64512   ;;  %vm3062_vm6 = vcmask (!%p266_p9), 130048   ;;  %vm5578_vm8 = vcmask (!%p266_p9), 73728   ;;  %s296_s13 = sand.u32 (!%p266_p9), 1, %s6362_s28   ;;  %s5840_s17 = sshll.u32 (!%p266_p9), %s6444_s9, 4 }
  0x10   : > { %321 = vperm.xlu0 (!%p266_p9), %6246, %v318_v1   ;;  %v633_v38 = vld [vmem:[%s7254_s3] sm:$0xff] (!%p266_p9)  ;;  %vm6853_vm7 = vmpackc.low (!%p266_p9), %vm3062_vm6, %vm3062_vm6  ;;  %s297_s18 = scalar_lea.vmem (!%p266_p9), [#allocation2], %s296_s13  ;;  %s7208_s22 = scalar_lea.hbm (!%p266_p9), %s7259_s8, %s5840_s17 }
  0x11   : > { %v934_v1 = vld [vmem:[%s7256_s5] sm:$0xff] (!%p266_p9)  ;;  %s5594_s23 = scalar_lea.sflag (!%p266_p9), [#allocation3], %s296_s13 }
  0x14   : > { %637 = vperm.xlu0 (!%p266_p9), %6246, %v634_v3  }
  0x15   : > { %s299_s19 = scalar_select %p298_p10, %s6444_s9, 1 }
  0x16   : > { %s6377_s9 = smov [#allocation2]  }
  0x17   : > { %s6201_s20 = smul.u32 112, %s299_s19  ;;  %s5606_s19 = sshll.u32 %s297_s18, 4  ;;  %s7210_s19 = int_to_ptr.vmem [resolvable:$true] %s5606_s19 }
  0x18   : > { %2449 = vperm.xlu0 %6246, %v5708_v8   ;;  %v5697_v8 = vld [vmem:[%s7255_s4 + $0x10] sm:$0xff]  ;;  %s6308_s24 = scalar_lea.vmem %s7210_s19, 16 }
  0x19   : > { %s302_s25 = scalar_lea.vmem %s7251_s0, %s6201_s20  ;;  %p6309_p11 = scmp.ne.s32.totalorder %s7210_s19, %s6308_s24 }
  0x1a   : > { %v305_v5 = vld [vmem:[%s302_s25 + $0x8] sm:$0xff]  ;;  %v312_v6 = vld [vmem:[%s302_s25 + $0x40] sm:$0x1]  ;;  %v307_v7 = vld [vmem:[%s302_s25 + $0x18] sm:$0xff] }
  0x1b   : > { %v5989_v9 = vpack.c.bf16 %v312_v6, %v305_v5  ;;  %v314_v10 = vld [vmem:[%s302_s25 + $0x50] sm:$0x1]  ;;  %v304_v11 = vld [vmem:[%s302_s25] sm:$0xff]  ;;  %v311_v12 = vld [vmem:[%s302_s25 + $0x38] sm:$0x1]  ;;  %p6310_p12 = pnand %p6309_p11, %p6461_p5 }
  0x1c   : > { %v5995_v13 = vpack.c.bf16 %v314_v10, %v307_v7  ;;  %v5992_v14 = vpack.c.bf16 %v311_v12, %v304_v11  ;;  %v306_v15 = vld [vmem:[%s302_s25 + $0x10] sm:$0xff]  ;;  %v313_v16 = vld [vmem:[%s302_s25 + $0x48] sm:$0x1]  ;;  %v316_v19 = vld [vmem:[%s302_s25 + $0x60] sm:$0x1] }
  0x1d   : > { %v309_v17 = vld [vmem:[%s302_s25 + $0x28] sm:$0xff]  ;;  %5991 = vmatprep.subr.msk.bf16.mxu0 %vm6484_vm2, %v5989_v9  ;;  %v5998_v18 = vpack.c.bf16 %v313_v16, %v306_v15  ;;  %v308_v20 = vld [vmem:[%s302_s25 + $0x20] sm:$0xff]  ;;  %v315_v21 = vld [vmem:[%s302_s25 + $0x58] sm:$0x1]  ;;  %p6311_p13 = pneg %p6310_p12 }
  0x1e   : > { %5997 = vmatprep.subr.msk.bf16.mxu1 %vm6484_vm2, %v5995_v13  ;;  %5994 = vmatpush1.bf16.msk.msra.mxu0 %vm6484_vm2, %v5992_v14  ;;  %v6001_v23 = vpack.c.bf16 %v316_v19, %v309_v17  ;;  %v6004_v24 = vpack.c.bf16 %v315_v21, %v308_v20  ;;  %v310_v25 = vld [vmem:[%s302_s25 + $0x30] sm:$0xff]  ;;  %v317_v26 = vld [vmem:[%s302_s25 + $0x68] sm:$0x1]  ;;  %s6312_s25 = sshll.u32 %s6377_s9, 4  ;;  %s6313_s25 = int_to_ptr.vmem [resolvable:$false] %s6312_s25 }
  0x1f   : > { %6000 = vmatpush1.bf16.msk.msra.mxu1 %vm6484_vm2, %v5998_v18  ;;  %v6008_v27 = vpack.c.bf16 %v317_v26, %v310_v25  ;;  %v5686_v7 = vld [vmem:[%s7255_s4 + $0x8] sm:$0xff]  ;;  %s6314_s26 = scalar_lea.vmem %s6313_s25, 32  ;;  %p6315_p0 = scmp.lt.s32.totalorder %s7210_s19, %s6313_s25 }
  0x20   : > { %6003 = vmatprep.subr.msk.bf16.mxu0 %vm6484_vm2, %v6001_v23  ;;  %6007 = vmatprep.subr.bf16.mxu1 %v6375_v28  ;;  %p6316_p1 = scmp.lt.s32.totalorder %s6314_s26, %s6308_s24 }
  0x21   : > { %5668 = vmatmul.mubr.msk.f32.vlgmr.msra.gmra.mrb[0].mxu0 %vm324_vm3, %v303_v22  ;;  %1241 = vperm.xlu1 %6247, %v5686_v7  }
  0x22   : > { %5671 = vmatmul.mubr.msk.f32.vlgmr.msra.gmra.mrb[0].mxu1 %vm324_vm3, %v303_v22  ;;  %6006 = vmatpush1.bf16.msk.msra.mxu0 %vm6484_vm2, %v6004_v24  ;;  %v5685_v24 = vld [vmem:[%s7254_s3 + $0x8] sm:$0xff]  ;;  %p6317_p2 = por %p6316_p1, %p6315_p0 }
  0x23   : > { %6010 = vmatpush3.bf16.msk.msra.mxu1 %vm6484_vm2, %v6008_v27  ;;  %556 = vmatprep.mubr.f32.mxu0 %v6372_v0 }
  0x24   : > { %5890 = vmatprep.mubr.msk.f32.mxu1 %vm6376_vm4, %v6372_v0  ;;  %p6318_p3 = pnand %p6317_p2, %p6311_p13 }
  0x25   : > { %5674 = vmatmul.mubr.msk.f32.vlgmr.msra.gmra.mrb[2].mxu0 %vm324_vm3, %v303_v22  ;;  %1845 = vperm.xlu1 %6247, %v5697_v8  }
  0x26   : > { %5891 = vmatmul.mubr.msk.f32.vlgmr.msra.gmra.mrb[2].mxu1 %vm324_vm3, %v303_v22  ;;  %708 = vmatprep.mubr.f32.mxu0 %v6372_v0 }
  0x27   : > { %779 = vmatprep.mubr.f32.mxu1 %v6372_v0 }
  0x8f   : > { %v322_v29 = vpop.permute.xlu0 %321 }
  0x93   : > { %v638_v46 = vpop.permute.xlu0 %637 }
  0xf4   : > { %v416_v30 = vpop.f32.mrb[0].mxu0 }
  0xf5   : > { %v487_v31 = vpop.f32.mrb[0].mxu1  ;;  %v418_v32 = vpop.f32.mrb[1].mxu0  ;;  %v6522_v36 = vadd.f32 %v416_v30, %v322_v29 }
  0xf6   : > { %v6518_v33 = vadd.f32 %v487_v31, %v322_v29  ;;  %v6520_v34 = vadd.f32 %v418_v32, %v322_v29  ;;  %v489_v35 = vpop.f32.mrb[1].mxu1 }
  0xf7   : > { %v6524_v37 = vadd.f32 %v489_v35, %v322_v29 }
  0xf8   : > { %v558_v39 = vpop.f32.mrb[2].mxu0  ;;  %644 = vmatprep.subr.mxu0 %v6520_v34 }
  0xf9   : > { %v629_v40 = vpop.f32.mrb[2].mxu1  ;;  %715 = vmatprep.subr.mxu1 %v6524_v37  ;;  %v560_v41 = vpop.f32.mrb[3].mxu0  ;;  %645 = vmatpush1.msra.mxu0 %v6522_v36  ;;  %v6538_v45 = vadd.f32 %v558_v39, %v322_v29 }
  0xfa   : > { %v6532_v42 = vadd.f32 %v629_v40, %v322_v29  ;;  %v6534_v43 = vadd.f32 %v560_v41, %v322_v29  ;;  %716 = vmatpush1.msra.mxu1 %v6518_v33  ;;  %5677 = vmatmul.mubr.msk.f32.vlgmr.msra.gmra.mrb[4].mxu0 %vm640_vm5, %v633_v38  ;;  %v5892_v44 = vpop.f32.mrb[3].mxu1 }
  0xfb   : > { %5678 = vmatmul.mubr.msk.f32.vlgmr.msra.gmra.mrb[4].mxu1 %vm640_vm5, %v633_v38  ;;  %5893 = vmatprep.subr.mxu1 %v6372_v0 }
  0xfc   : > { %5894 = vmatpush3.msra.mxu1 %v6532_v42  ;;  %786 = vmatprep.subr.mxu0 %v6534_v43 }
  0xfd   : > { %787 = vmatpush1.msra.mxu0 %v6538_v45  ;;  %850 = vmatprep.mubr.f32.mxu0 %v6372_v0 }
  0xfe   : > { %5895 = vmatprep.mubr.msk.f32.mxu1 %vm6376_vm4, %v6372_v0  ;;  %5679 = vmatmul.mubr.msk.f32.vlgmr.msra.gmra.mrb[6].mxu0 %vm640_vm5, %v633_v38 }
  0xff   : > { %5896 = vmatmul.mubr.msk.f32.vlgmr.msra.gmra.mrb[6].mxu1 %vm640_vm5, %v633_v38  ;;  %1002 = vmatprep.mubr.f32.mxu0 %v6372_v0 }
 0x100   : > { %1073 = vmatprep.mubr.f32.mxu1 %v6372_v0 }
 0x1cd   : > { %v710_v47 = vpop.f32.mrb[4].mxu0 }
 0x1ce   : > { %v711_v48 = vadd.f32 %v710_v47, %v638_v46  ;;  %v781_v49 = vpop.f32.mrb[4].mxu1  ;;  %v712_v50 = vpop.f32.mrb[5].mxu0 }
 0x1cf   : > { %v713_v51 = vadd.f32 %v712_v50, %v638_v46  ;;  %v783_v52 = vpop.f32.mrb[5].mxu1  ;;  %v782_v53 = vadd.f32 %v781_v49, %v638_v46 }
 0x1d0   : > { %v784_v54 = vadd.f32 %v783_v52, %v638_v46  ;;  %6248 = vtanh.f32 %v711_v48  ;;  %v5691_v52 = vld [vmem:[%s7256_s5 + $0x8] sm:$0xff] }
 0x1d1   : > { %v852_v55 = vpop.f32.mrb[6].mxu0  ;;  %6250 = vtanh.f32 %v713_v51 }
 0x1d2   : > { %v923_v56 = vpop.f32.mrb[6].mxu1  ;;  %v854_v57 = vpop.f32.mrb[7].mxu0  ;;  %6252 = vtanh.f32 %v784_v54  ;;  %v853_v58 = vadd.f32 %v852_v55, %v638_v46 }
 0x1d3   : > { %v924_v59 = vadd.f32 %v923_v56, %v638_v46  ;;  %v855_v60 = vadd.f32 %v854_v57, %v638_v46  ;;  %v5897_v61 = vpop.f32.mrb[7].mxu1  ;;  %6254 = vtanh.f32 %v782_v53 }
 0x1d5   : > { %6256 = vtanh.f32 %v924_v59 }
 0x1d6   : > { %6258 = vtanh.f32 %v855_v60 }
 0x1d7   : > { %6260 = vtanh.f32 %v853_v58 }
 0x1da   : > { %v6249_v62 = vpop.eup %6248 }
 0x1db   : > { %v6251_v63 = vpop.eup %6250 }
 0x1dc   : > { %v6253_v2 = vpop.eup %6252  ;;  %938 = vmatprep.subr.mxu0 %v6251_v63 }
 0x1dd   : > { %v6255_v3 = vpop.eup %6254  ;;  %1009 = vmatprep.subr.mxu1 %v6253_v2  ;;  %939 = vmatpush1.msra.mxu0 %v6249_v62 }
 0x1de   : > { %1010 = vmatpush1.msra.mxu1 %v6255_v3  ;;  %5681 = vmatmul.mubr.msk.f32.vlgmr.msra.gmra.mrb[8].mxu0 %vm640_vm5, %v934_v1 }
 0x1df   : > { %v6257_v4 = vpop.eup %6256  ;;  %5682 = vmatmul.mubr.msk.f32.vlgmr.msra.gmra.mrb[8].mxu1 %vm640_vm5, %v934_v1  ;;  %5898 = vmatprep.subr.mxu1 %v6372_v0 }
 0x1e0   : > { %v6259_v5 = vpop.eup %6258  ;;  %5899 = vmatpush3.msra.mxu1 %v6257_v4  ;;  %1144 = vmatprep.mubr.f32.mxu0 %v6372_v0 }
 0x1e1   : > { %v6261_v6 = vpop.eup %6260  ;;  %1080 = vmatprep.subr.mxu0 %v6259_v5  ;;  %5900 = vmatprep.mubr.msk.f32.mxu1 %vm6376_vm4, %v6372_v0 }
 0x1e2   : > { %1081 = vmatpush1.msra.mxu0 %v6261_v6 }
 0x1e3   : > { %5683 = vmatmul.mubr.msk.f32.vlgmr.msra.gmra.mrb[10].mxu0 %vm640_vm5, %v934_v1  ;;  %5901 = vmatmul.mubr.msk.f32.vlgmr.msra.gmra.mrb[10].mxu1 %vm640_vm5, %v934_v1 }
 0x1e4   : > { %1311 = vmatprep.mubr.f32.mxu0 %v6372_v0  ;;  %1382 = vmatprep.mubr.f32.mxu1 %v6372_v0 }
 0x2b1   : > { %v1004_v9 = vpop.f32.mrb[8].mxu0 }
 0x2b2   : > { %v1221_v10 = vmul.f32 0.5, %v1004_v9  ;;  %v1075_v11 = vpop.f32.mrb[8].mxu1  ;;  %v1006_v12 = vpop.f32.mrb[9].mxu0  ;;  %v5696_v9 = vld [vmem:[%s7254_s3 + $0x10] sm:$0xff] }
 0x2b3   : > { %v1223_v13 = vmul.f32 0.5, %v1075_v11  ;;  %v1222_v14 = vmul.f32 0.5, %v1006_v12  ;;  %v1077_v15 = vpop.f32.mrb[9].mxu1 }
 0x2b4   : > { %v1224_v16 = vmul.f32 0.5, %v1077_v15  ;;  %v6575_v19 = vadd.f32 %v1221_v10, %v6522_v36 }
 0x2b5   : > { %v6572_v17 = vadd.f32 %v1222_v14, %v6520_v34  ;;  %v6584_v25 = vadd.f32 %v1223_v13, %v6518_v33  ;;  %v1242_v33 = vpop.permute.xlu1 %1241 }
 0x2b6   : > { %v1146_v18 = vpop.f32.mrb[10].mxu0  ;;  %v6578_v20 = vadd.f32 %v1224_v16, %v6524_v37  ;;  %v1217_v22 = vpop.f32.mrb[10].mxu1 }
 0x2b7   : > { %v1225_v21 = vmul.f32 0.5, %v1146_v18  ;;  %v1148_v23 = vpop.f32.mrb[11].mxu0  ;;  %v1227_v26 = vmul.f32 0.5, %v1217_v22  ;;  %1247 = vmatprep.subr.mxu0 %v6572_v17  ;;  %v5902_v29 = vpop.f32.mrb[11].mxu1 }
 0x2b8   : > { %v1226_v27 = vmul.f32 0.5, %v1148_v23  ;;  %1318 = vmatprep.subr.mxu1 %v6578_v20  ;;  %1248 = vmatpush1.msra.mxu0 %v6575_v19 }
 0x2b9   : > { %v6590_v30 = vadd.f32 %v1227_v26, %v6532_v42  ;;  %1319 = vmatpush1.msra.mxu1 %v6584_v25  ;;  %5687 = vmatmul.mubr.msk.f32.vlgmr.msra.gmra.mrb[12].mxu0 %vm640_vm5, %v5685_v24  ;;  %v6598_v32 = vadd.f32 %v1225_v21, %v6538_v45 }
 0x2ba   : > { %v6593_v31 = vadd.f32 %v1226_v27, %v6534_v43  ;;  %5688 = vmatmul.mubr.msk.f32.vlgmr.msra.gmra.mrb[12].mxu1 %vm640_vm5, %v5685_v24  ;;  %5903 = vmatprep.subr.mxu1 %v6372_v0 }
 0x2bb   : > { %5904 = vmatpush3.msra.mxu1 %v6590_v30  ;;  %1453 = vmatprep.mubr.f32.mxu0 %v6372_v0 }
 0x2bc   : > { %1389 = vmatprep.subr.mxu0 %v6593_v31  ;;  %5905 = vmatprep.mubr.msk.f32.mxu1 %vm6376_vm4, %v6372_v0 }
 0x2bd   : > { %1390 = vmatpush1.msra.mxu0 %v6598_v32 }
 0x2be   : > { %5689 = vmatmul.mubr.msk.f32.vlgmr.msra.gmra.mrb[14].mxu0 %vm640_vm5, %v5685_v24  ;;  %5906 = vmatmul.mubr.msk.f32.vlgmr.msra.gmra.mrb[14].mxu1 %vm640_vm5, %v5685_v24 }
 0x2bf   : > { %1606 = vmatprep.mubr.f32.mxu0 %v6372_v0  ;;  %1677 = vmatprep.mubr.f32.mxu1 %v6372_v0 }
 0x38c   : > { %v1313_v34 = vpop.f32.mrb[12].mxu0 }
 0x38d   : > { %v1314_v35 = vadd.f32 %v1313_v34, %v1242_v33  ;;  %v1384_v36 = vpop.f32.mrb[12].mxu1  ;;  %v1315_v37 = vpop.f32.mrb[13].mxu0 }
 0x38e   : > { %v1385_v38 = vadd.f32 %v1384_v36, %v1242_v33  ;;  %v1316_v39 = vadd.f32 %v1315_v37, %v1242_v33  ;;  %v1386_v40 = vpop.f32.mrb[13].mxu1  ;;  %v5702_v36 = vld [vmem:[%s7256_s5 + $0x10] sm:$0xff] }
 0x38f   : > { %6262 = vtanh.f32 %v1314_v35  ;;  %v1387_v41 = vadd.f32 %v1386_v40, %v1242_v33 }
 0x390   : > { %6264 = vtanh.f32 %v1385_v38 }
 0x391   : > { %v1455_v42 = vpop.f32.mrb[14].mxu0  ;;  %6266 = vtanh.f32 %v1316_v39  ;;  %v1526_v43 = vpop.f32.mrb[14].mxu1 }
 0x392   : > { %v1457_v44 = vpop.f32.mrb[15].mxu0  ;;  %6268 = vtanh.f32 %v1387_v41  ;;  %v1456_v45 = vadd.f32 %v1455_v42, %v1242_v33  ;;  %v1527_v46 = vadd.f32 %v1526_v43, %v1242_v33  ;;  %v5907_v48 = vpop.f32.mrb[15].mxu1 }
 0x393   : > { %v1458_v47 = vadd.f32 %v1457_v44, %v1242_v33 }
 0x394   : > { %6270 = vtanh.f32 %v1527_v46 }
 0x395   : > { %6272 = vtanh.f32 %v1458_v47 }
 0x396   : > { %6274 = vtanh.f32 %v1456_v45 }
 0x399   : > { %v6263_v49 = vpop.eup %6262 }
 0x39a   : > { %v6265_v50 = vpop.eup %6264 }
 0x39b   : > { %v6267_v51 = vpop.eup %6266 }
 0x39c   : > { %v6269_v53 = vpop.eup %6268  ;;  %1542 = vmatprep.subr.mxu0 %v6267_v51 }
 0x39d   : > { %1613 = vmatprep.subr.mxu1 %v6269_v53  ;;  %1543 = vmatpush1.msra.mxu0 %v6263_v49 }
 0x39e   : > { %v6271_v54 = vpop.eup %6270  ;;  %1614 = vmatpush1.msra.mxu1 %v6265_v50  ;;  %5692 = vmatmul.mubr.msk.f32.vlgmr.msra.gmra.mrb[16].mxu0 %vm640_vm5, %v5691_v52 }
 0x39f   : > { %v6273_v55 = vpop.eup %6272  ;;  %5693 = vmatmul.mubr.msk.f32.vlgmr.msra.gmra.mrb[16].mxu1 %vm640_vm5, %v5691_v52  ;;  %5908 = vmatprep.subr.mxu1 %v6372_v0 }
 0x3a0   : > { %v6275_v56 = vpop.eup %6274  ;;  %5909 = vmatpush3.msra.mxu1 %v6271_v54  ;;  %1684 = vmatprep.subr.mxu0 %v6273_v55 }
 0x3a1   : > { %1685 = vmatpush1.msra.mxu0 %v6275_v56  ;;  %1748 = vmatprep.mubr.f32.mxu0 %v6372_v0 }
 0x3a2   : > { %5910 = vmatprep.mubr.msk.f32.mxu1 %vm6376_vm4, %v6372_v0  ;;  %5694 = vmatmul.mubr.msk.f32.vlgmr.msra.gmra.mrb[18].mxu0 %vm640_vm5, %v5691_v52 }
 0x3a3   : > { %5911 = vmatmul.mubr.msk.f32.vlgmr.msra.gmra.mrb[18].mxu1 %vm640_vm5, %v5691_v52  ;;  %1915 = vmatprep.mubr.f32.mxu0 %v6372_v0 }
 0x3a4   : > { %1986 = vmatprep.mubr.f32.mxu1 %v6372_v0 }
 0x471   : > { %v1608_v57 = vpop.f32.mrb[16].mxu0 }
 0x472   : > { %v1825_v58 = vmul.f32 0.5, %v1608_v57  ;;  %v1679_v59 = vpop.f32.mrb[16].mxu1  ;;  %v1610_v60 = vpop.f32.mrb[17].mxu0  ;;  %v5707_v57 = vld [vmem:[%s7254_s3 + $0x18] sm:$0xff] }
 0x473   : > { %v1827_v61 = vmul.f32 0.5, %v1679_v59  ;;  %v1826_v62 = vmul.f32 0.5, %v1610_v60  ;;  %v1681_v63 = vpop.f32.mrb[17].mxu1 }
 0x474   : > { %v1828_v1 = vmul.f32 0.5, %v1681_v63  ;;  %v6629_v4 = vadd.f32 %v1825_v58, %v6575_v19 }
 0x475   : > { %v6626_v2 = vadd.f32 %v1826_v62, %v6572_v17  ;;  %v1750_v3 = vpop.f32.mrb[18].mxu0  ;;  %v6638_v10 = vadd.f32 %v1827_v61, %v6584_v25  ;;  %v1846_v17 = vpop.permute.xlu1 %1845 }
 0x476   : > { %v6632_v5 = vadd.f32 %v1828_v1, %v6578_v20  ;;  %v1829_v6 = vmul.f32 0.5, %v1750_v3  ;;  %v1821_v7 = vpop.f32.mrb[18].mxu1  ;;  %v1752_v8 = vpop.f32.mrb[19].mxu0 }
 0x477   : > { %v1831_v11 = vmul.f32 0.5, %v1821_v7  ;;  %v1830_v12 = vmul.f32 0.5, %v1752_v8  ;;  %1851 = vmatprep.subr.mxu0 %v6626_v2  ;;  %v5912_v13 = vpop.f32.mrb[19].mxu1 }
 0x478   : > { %1922 = vmatprep.subr.mxu1 %v6632_v5  ;;  %1852 = vmatpush1.msra.mxu0 %v6629_v4  ;;  %v6652_v16 = vadd.f32 %v1829_v6, %v6598_v32 }
 0x479   : > { %v6644_v14 = vadd.f32 %v1831_v11, %v6590_v30  ;;  %v6647_v15 = vadd.f32 %v1830_v12, %v6593_v31  ;;  %1923 = vmatpush1.msra.mxu1 %v6638_v10  ;;  %5698 = vmatmul.mubr.msk.f32.vlgmr.msra.gmra.mrb[20].mxu0 %vm640_vm5, %v5696_v9 }
 0x47a   : > { %5699 = vmatmul.mubr.msk.f32.vlgmr.msra.gmra.mrb[20].mxu1 %vm640_vm5, %v5696_v9  ;;  %5913 = vmatprep.subr.mxu1 %v6372_v0 }
 0x47b   : > { %5914 = vmatpush3.msra.mxu1 %v6644_v14  ;;  %1993 = vmatprep.subr.mxu0 %v6647_v15 }
 0x47c   : > { %1994 = vmatpush1.msra.mxu0 %v6652_v16  ;;  %2057 = vmatprep.mubr.f32.mxu0 %v6372_v0 }
 0x47d   : > { %5915 = vmatprep.mubr.msk.f32.mxu1 %vm6376_vm4, %v6372_v0  ;;  %5700 = vmatmul.mubr.msk.f32.vlgmr.msra.gmra.mrb[22].mxu0 %vm640_vm5, %v5696_v9 }
 0x47e   : > { %5916 = vmatmul.mubr.msk.f32.vlgmr.msra.gmra.mrb[22].mxu1 %vm640_vm5, %v5696_v9  ;;  %2210 = vmatprep.mubr.f32.mxu0 %v6372_v0 }
 0x47f   : > { %2281 = vmatprep.mubr.f32.mxu1 %v6372_v0 }
 0x54c   : > { %v1917_v18 = vpop.f32.mrb[20].mxu0 }
 0x54d   : > { %v1918_v19 = vadd.f32 %v1917_v18, %v1846_v17  ;;  %v1988_v20 = vpop.f32.mrb[20].mxu1  ;;  %v1919_v21 = vpop.f32.mrb[21].mxu0 }
 0x54e   : > { %v1920_v22 = vadd.f32 %v1919_v21, %v1846_v17  ;;  %v1990_v23 = vpop.f32.mrb[21].mxu1  ;;  %v1989_v24 = vadd.f32 %v1988_v20, %v1846_v17  ;;  %v5713_v20 = vld [vmem:[%s7256_s5 + $0x18] sm:$0xff] }
 0x54f   : > { %v1991_v25 = vadd.f32 %v1990_v23, %v1846_v17  ;;  %6276 = vtanh.f32 %v1918_v19  ;;  %v3056_v23 = vld [vmem:[%s7257_s6 + $0x40] sm:$0x3] }
 0x550   : > { %v2059_v26 = vpop.f32.mrb[22].mxu0  ;;  %6278 = vtanh.f32 %v1920_v22  ;;  %v3049_v22 = vld [vmem:[%s7257_s6 + $0x8] sm:$0xff] }
 0x551   : > { %v2130_v27 = vpop.f32.mrb[22].mxu1  ;;  %v2061_v29 = vpop.f32.mrb[23].mxu0  ;;  %6280 = vtanh.f32 %v1991_v25  ;;  %v2060_v30 = vadd.f32 %v2059_v26, %v1846_v17 }
 0x552   : > { %v2131_v31 = vadd.f32 %v2130_v27, %v1846_v17  ;;  %v2062_v32 = vadd.f32 %v2061_v29, %v1846_v17  ;;  %v5917_v33 = vpop.f32.mrb[23].mxu1  ;;  %6282 = vtanh.f32 %v1989_v24  ;;  %v6011_v27 = vpack.c.bf16 %v3056_v23, %v3049_v22  ;;  %v5783_v22 = vld [vmem:[%s7257_s6 + $0x218] sm:$0x3] }
 0x553   : > { %v5773_v33 = vld [vmem:[%s7257_s6 + $0x1c8] sm:$0xff] }
 0x554   : > { %6284 = vtanh.f32 %v2131_v31  ;;  %v3055_v31 = vld [vmem:[%s7257_s6 + $0x38] sm:$0x3] }
 0x555   : > { %6286 = vtanh.f32 %v2062_v32 }
 0x556   : > { %6288 = vtanh.f32 %v2060_v30  ;;  %v3048_v30 = vld [vmem:[%s7257_s6] sm:$0xff] }
 0x557   : > { %v6013_v32 = vpack.c.bf16 %v3055_v31, %v3048_v30  ;;  %v5729_v30 = vld [vmem:[%s7257_s6 + $0xb0] sm:$0x3] }
 0x559   : > { %v6277_v34 = vpop.eup %6276 }
 0x55a   : > { %v6279_v35 = vpop.eup %6278 }
 0x55b   : > { %v6281_v37 = vpop.eup %6280  ;;  %2146 = vmatprep.subr.mxu0 %v6279_v35 }
 0x55c   : > { %v6283_v38 = vpop.eup %6282  ;;  %2217 = vmatprep.subr.mxu1 %v6281_v37  ;;  %2147 = vmatpush1.msra.mxu0 %v6277_v34  ;;  %v5780_v34 = vld [vmem:[%s7257_s6 + $0x200] sm:$0x3]  ;;  %v5779_v37 = vld [vmem:[%s7257_s6 + $0x1f8] sm:$0x3] }
 0x55d   : > { %2218 = vmatpush1.msra.mxu1 %v6283_v38  ;;  %5703 = vmatmul.mubr.msk.f32.vlgmr.msra.gmra.mrb[24].mxu0 %vm640_vm5, %v5702_v36  ;;  %v6075_v35 = vpack.c.bf16 %v5780_v34, %v5773_v33  ;;  %v5778_v33 = vld [vmem:[%s7257_s6 + $0x1f0] sm:$0xff]  ;;  %v5785_v34 = vld [vmem:[%s7257_s6 + $0x228] sm:$0x3] }
 0x55e   : > { %v6285_v39 = vpop.eup %6284  ;;  %5704 = vmatmul.mubr.msk.f32.vlgmr.msra.gmra.mrb[24].mxu1 %vm640_vm5, %v5702_v36  ;;  %5918 = vmatprep.subr.mxu1 %v6372_v0 }
 0x55f   : > { %v6287_v40 = vpop.eup %6286  ;;  %5919 = vmatpush3.msra.mxu1 %v6285_v39  ;;  %2352 = vmatprep.mubr.f32.mxu0 %v6372_v0  ;;  %v3051_v39 = vld [vmem:[%s7257_s6 + $0x18] sm:$0xff] }
 0x560   : > { %v6289_v41 = vpop.eup %6288  ;;  %2288 = vmatprep.subr.mxu0 %v6287_v40  ;;  %5920 = vmatprep.mubr.msk.f32.mxu1 %vm6376_vm4, %v6372_v0  ;;  %v3058_v40 = vld [vmem:[%s7257_s6 + $0x50] sm:$0x3] }
 0x561   : > { %2289 = vmatpush1.msra.mxu0 %v6289_v41  ;;  %v6015_v41 = vpack.c.bf16 %v3058_v40, %v3051_v39 }
 0x562   : > { %5705 = vmatmul.mubr.msk.f32.vlgmr.msra.gmra.mrb[26].mxu0 %vm640_vm5, %v5702_v36  ;;  %5921 = vmatmul.mubr.msk.f32.vlgmr.msra.gmra.mrb[26].mxu1 %vm640_vm5, %v5702_v36  ;;  %v5772_v36 = vld [vmem:[%s7257_s6 + $0x1c0] sm:$0xff] }
 0x563   : > { %2519 = vmatprep.mubr.f32.mxu0 %v6372_v0  ;;  %2590 = vmatprep.mubr.f32.mxu1 %v6372_v0  ;;  %v6077_v38 = vpack.c.bf16 %v5779_v37, %v5772_v36  ;;  %v5797_v37 = vld [vmem:[%s7257_s6 + $0x270] sm:$0x3] }
 0x630   : > { %v2212_v42 = vpop.f32.mrb[24].mxu0 }
 0x631   : > { %v2429_v43 = vmul.f32 0.5, %v2212_v42  ;;  %v2283_v44 = vpop.f32.mrb[24].mxu1  ;;  %v2214_v45 = vpop.f32.mrb[25].mxu0  ;;  %v5775_v42 = vld [vmem:[%s7257_s6 + $0x1d8] sm:$0xff] }
 0x632   : > { %v2431_v46 = vmul.f32 0.5, %v2283_v44  ;;  %v2430_v47 = vmul.f32 0.5, %v2214_v45  ;;  %v2285_v48 = vpop.f32.mrb[25].mxu1 }
 0x633   : > { %v2432_v49 = vmul.f32 0.5, %v2285_v48  ;;  %v6683_v52 = vadd.f32 %v2429_v43, %v6629_v4  ;;  %v5782_v43 = vld [vmem:[%s7257_s6 + $0x210] sm:$0x3] }
 0x634   : > { %v6680_v50 = vadd.f32 %v2430_v47, %v6626_v2  ;;  %v6692_v58 = vadd.f32 %v2431_v46, %v6638_v10  ;;  %v2450_v2 = vpop.permute.xlu0 %2449  ;;  %v6079_v44 = vpack.c.bf16 %v5782_v43, %v5775_v42  ;;  %v5721_v42 = vld [vmem:[%s7257_s6 + $0x70] sm:$0xff]  ;;  %v5728_v43 = vld [vmem:[%s7257_s6 + $0xa8] sm:$0x3] }
 0x635   : > { %v2354_v51 = vpop.f32.mrb[26].mxu0  ;;  %v6686_v53 = vadd.f32 %v2432_v49, %v6632_v5  ;;  %v2425_v55 = vpop.f32.mrb[26].mxu1  ;;  %v3050_v49 = vld [vmem:[%s7257_s6 + $0x10] sm:$0xff] }
 0x636   : > { %v2433_v54 = vmul.f32 0.5, %v2354_v51  ;;  %v2356_v56 = vpop.f32.mrb[27].mxu0  ;;  %v2435_v59 = vmul.f32 0.5, %v2425_v55  ;;  %2455 = vmatprep.subr.mxu0 %v6680_v50  ;;  %v5922_v61 = vpop.f32.mrb[27].mxu1  ;;  %v3057_v51 = vld [vmem:[%s7257_s6 + $0x48] sm:$0x3] }
 0x637   : > { %v2434_v60 = vmul.f32 0.5, %v2356_v56  ;;  %2526 = vmatprep.subr.mxu1 %v6686_v53  ;;  %2456 = vmatpush1.msra.mxu0 %v6683_v52  ;;  %v3053_v56 = vld [vmem:[%s7257_s6 + $0x28] sm:$0xff] }
 0x638   : > { %v6698_v62 = vadd.f32 %v2435_v59, %v6644_v14  ;;  %2527 = vmatpush1.msra.mxu1 %v6692_v58  ;;  %5709 = vmatmul.mubr.msk.f32.vlgmr.msra.gmra.mrb[28].mxu0 %vm640_vm5, %v5707_v57  ;;  %v6706_v1 = vadd.f32 %v2433_v54, %v6652_v16 }
 0x639   : > { %v6701_v63 = vadd.f32 %v2434_v60, %v6647_v15  ;;  %5710 = vmatmul.mubr.msk.f32.vlgmr.msra.gmra.mrb[28].mxu1 %vm640_vm5, %v5707_v57  ;;  %5923 = vmatprep.subr.mxu1 %v6372_v0 }
 0x63a   : > { %5924 = vmatpush3.msra.mxu1 %v6698_v62  ;;  %2661 = vmatprep.mubr.f32.mxu0 %v6372_v0 }
 0x63b   : > { %2597 = vmatprep.subr.mxu0 %v6701_v63  ;;  %5925 = vmatprep.mubr.msk.f32.mxu1 %vm6376_vm4, %v6372_v0 }
 0x63c   : > { %2598 = vmatpush1.msra.mxu0 %v6706_v1 }
 0x63d   : > { %5711 = vmatmul.mubr.msk.f32.vlgmr.msra.gmra.mrb[30].mxu0 %vm640_vm5, %v5707_v57  ;;  %5926 = vmatmul.mubr.msk.f32.vlgmr.msra.gmra.mrb[30].mxu1 %vm640_vm5, %v5707_v57  ;;  %v3060_v57 = vld [vmem:[%s7257_s6 + $0x60] sm:$0x3] }
 0x63e   : > { %2814 = vmatprep.mubr.f32.mxu0 %v6372_v0  ;;  %2885 = vmatprep.mubr.f32.mxu1 %v6372_v0 }
 0x70b   : > { %v2521_v3 = vpop.f32.mrb[28].mxu0 }
 0x70c   : > { %v2522_v4 = vadd.f32 %v2521_v3, %v2450_v2  ;;  %v2592_v5 = vpop.f32.mrb[28].mxu1  ;;  %v2523_v6 = vpop.f32.mrb[29].mxu0  ;;  %v6017_v3 = vpack.c.bf16 %v3057_v51, %v3050_v49  ;;  %v5796_v49 = vld [vmem:[%s7257_s6 + $0x268] sm:$0x3] }
 0x70d   : > { %v2524_v7 = vadd.f32 %v2523_v6, %v2450_v2  ;;  %v2594_v8 = vpop.f32.mrb[29].mxu1  ;;  %v2593_v9 = vadd.f32 %v2592_v5, %v2450_v2  ;;  %v5781_v5 = vld [vmem:[%s7257_s6 + $0x208] sm:$0x3] }
 0x70e   : > { %v2595_v10 = vadd.f32 %v2594_v8, %v2450_v2  ;;  %6290 = vtanh.f32 %v2522_v4  ;;  %v5774_v4 = vld [vmem:[%s7257_s6 + $0x1d0] sm:$0xff] }
 0x70f   : > { %6292 = vtanh.f32 %v2524_v7 }
 0x710   : > { %v2663_v11 = vpop.f32.mrb[30].mxu0  ;;  %v2734_v12 = vpop.f32.mrb[30].mxu1  ;;  %6294 = vtanh.f32 %v2595_v10 }
 0x711   : > { %v2665_v13 = vpop.f32.mrb[31].mxu0  ;;  %v2664_v14 = vadd.f32 %v2663_v11, %v2450_v2  ;;  %v2735_v15 = vadd.f32 %v2734_v12, %v2450_v2  ;;  %v5927_v17 = vpop.f32.mrb[31].mxu1  ;;  %6296 = vtanh.f32 %v2593_v9  ;;  %v5784_v9 = vld [vmem:[%s7257_s6 + $0x220] sm:$0x3] }
 0x712   : > { %v2666_v16 = vadd.f32 %v2665_v13, %v2450_v2  ;;  %v3052_v17 = vld [vmem:[%s7257_s6 + $0x20] sm:$0xff] }
 0x713   : > { %6298 = vtanh.f32 %v2735_v15 }
 0x714   : > { %6300 = vtanh.f32 %v2666_v16 }
 0x715   : > { %6302 = vtanh.f32 %v2664_v14 }
 0x718   : > { %v6291_v18 = vpop.eup %6290 }
 0x719   : > { %v6293_v19 = vpop.eup %6292 }
 0x71a   : > { %v6295_v21 = vpop.eup %6294  ;;  %2750 = vmatprep.subr.mxu0 %v6293_v19 }
 0x71b   : > { %v6297_v24 = vpop.eup %6296  ;;  %2821 = vmatprep.subr.mxu1 %v6295_v21  ;;  %2751 = vmatpush1.msra.mxu0 %v6291_v18  ;;  %v3059_v18 = vld [vmem:[%s7257_s6 + $0x58] sm:$0x3]  ;;  %v5776_v21 = vld [vmem:[%s7257_s6 + $0x1e0] sm:$0xff] }
 0x71c   : > { %2822 = vmatpush1.msra.mxu1 %v6297_v24  ;;  %5714 = vmatmul.mubr.msk.f32.vlgmr.msra.gmra.mrb[32].mxu0 %vm640_vm5, %v5713_v20  ;;  %v6085_v24 = vpack.c.bf16 %v5783_v22, %v5776_v21  ;;  %v5793_v21 = vld [vmem:[%s7257_s6 + $0x250] sm:$0xff]  ;;  %v5800_v22 = vld [vmem:[%s7257_s6 + $0x288] sm:$0x3] }
 0x71d   : > { %v6299_v25 = vpop.eup %6298  ;;  %5715 = vmatmul.mubr.msk.f32.vlgmr.msra.gmra.mrb[32].mxu1 %vm640_vm5, %v5713_v20  ;;  %5928 = vmatprep.subr.mxu1 %v6372_v0 }
 0x71e   : > { %v6301_v26 = vpop.eup %6300  ;;  %5929 = vmatpush3.msra.mxu1 %v6299_v25  ;;  %2956 = vmatprep.mubr.f32.mxu0 %v6372_v0 }
 0x71f   : > { %v6303_v29 = vpop.eup %6302  ;;  %2892 = vmatprep.subr.mxu0 %v6301_v26  ;;  %5930 = vmatprep.mubr.msk.f32.mxu1 %vm6376_vm4, %v6372_v0 }
 0x720   : > { %2893 = vmatpush1.msra.mxu0 %v6303_v29  ;;  %6012 = vmatprep.subr.bf16.mxu1 %v6011_v27  ;;  %v3054_v27 = vld [vmem:[%s7257_s6 + $0x30] sm:$0xff]  ;;  %v5722_v29 = vld [vmem:[%s7257_s6 + $0x78] sm:$0xff] }
 0x721   : > { %5716 = vmatmul.mubr.msk.f32.vlgmr.msra.gmra.mrb[34].mxu0 %vm640_vm5, %v5713_v20  ;;  %5931 = vmatmul.mubr.msk.f32.vlgmr.msra.gmra.mrb[34].mxu1 %vm640_vm5, %v5713_v20  ;;  %v6021_v20 = vpack.c.bf16 %v3059_v18, %v3052_v17  ;;  %v6027_v36 = vpack.c.bf16 %v5729_v30, %v5722_v29  ;;  %v5725_v17 = vld [vmem:[%s7257_s6 + $0x90] sm:$0xff]  ;;  %v5732_v18 = vld [vmem:[%s7257_s6 + $0xc8] sm:$0x3]  ;;  %v5734_v29 = vld [vmem:[%s7257_s6 + $0xd8] sm:$0x3] }
 0x722   : > { %6076 = vmatprep.subr.bf16.mxu0 %v6075_v35  ;;  %v5739_v30 = vld [vmem:[%s7257_s6 + $0xe8] sm:$0xff] }
 0x725   : > { %6014 = vmatpush1.bf16.xpose.msra.mxu1 %v6013_v32 }
 0x726   : > { %6016 = vmatprep.subr.bf16.mxu1 %v6015_v41 }
 0x727   : > { %6078 = vmatpush1.bf16.xpose.msra.mxu0 %v6077_v38  ;;  %v6088_v38 = vpack.c.bf16 %v5785_v34, %v5778_v33  ;;  %v5795_v34 = vld [vmem:[%s7257_s6 + $0x260] sm:$0xff] }
 0x728   : > { %6080 = vmatprep.subr.bf16.mxu0 %v6079_v44  ;;  %v5724_v44 = vld [vmem:[%s7257_s6 + $0x88] sm:$0xff] }
 0x7ef   : > { %v2816_v45 = vpop.f32.mrb[32].mxu0 }
 0x7f0   : > { %v3033_v46 = vmul.f32 0.5, %v2816_v45  ;;  %v2887_v47 = vpop.f32.mrb[32].mxu1  ;;  %v2818_v48 = vpop.f32.mrb[33].mxu0  ;;  %v5731_v45 = vld [vmem:[%s7257_s6 + $0xc0] sm:$0x3] }
 0x7f1   : > { %v3034_v54 = vmul.f32 0.5, %v2818_v48  ;;  %v2889_v55 = vpop.f32.mrb[33].mxu1  ;;  %v3035_v12 = vmul.f32 0.5, %v2887_v47  ;;  %v6029_v47 = vpack.c.bf16 %v5728_v43, %v5721_v42  ;;  %v5789_v48 = vld [vmem:[%s7257_s6 + $0x230] sm:$0xff]  ;;  %v6031_v51 = vpack.c.bf16 %v5731_v45, %v5724_v44  ;;  %v5738_v43 = vld [vmem:[%s7257_s6 + $0xe0] sm:$0xff]  ;;  %v5741_v45 = vld [vmem:[%s7257_s6 + $0xf8] sm:$0xff] }
 0x7f2   : > { %v3036_v59 = vmul.f32 0.5, %v2889_v55  ;;  %v6780_v60 = vadd.f32 %v3033_v46, %v6683_v52  ;;  %v6019_v52 = vpack.c.bf16 %v3060_v57, %v3053_v56  ;;  %v6093_v56 = vpack.c.bf16 %v5796_v49, %v5789_v48  ;;  %v5745_v44 = vld [vmem:[%s7257_s6 + $0x118] sm:$0x3]  ;;  %v5806_v49 = vld [vmem:[%s7257_s6 + $0x2a0] sm:$0xff] }
 0x7f3   : > { %v6783_v61 = vadd.f32 %v3034_v54, %v6680_v50  ;;  %v5777_v50 = vld [vmem:[%s7257_s6 + $0x1e8] sm:$0xff]  ;;  %v6813_v19 = vadd.f32 %v3035_v12, %v6692_v58  ;;  %v6045_v48 = vpack.c.bf16 %v5745_v44, %v5738_v43 }
 0x7f4   : > { %v2958_v2 = vpop.f32.mrb[34].mxu0  ;;  %v6792_v6 = vadd.f32 %v3036_v59, %v6686_v53  ;;  %v3029_v7 = vpop.f32.mrb[34].mxu1  ;;  %v6081_v53 = vpack.c.bf16 %v5781_v5, %v5774_v4  ;;  %v4325_v13 = vrot.slane %v6780_v60, 4  ;;  %v6083_v14 = vpack.c.bf16 %v5784_v9, %v5777_v50  ;;  %v5792_v54 = vld [vmem:[%s7257_s6 + $0x248] sm:$0xff]  ;;  %v5730_v4 = vld [vmem:[%s7257_s6 + $0xb8] sm:$0x3] }
 0x7f5   : > { %v2960_v8 = vpop.f32.mrb[35].mxu0  ;;  %3136 = vmatprep.mubr.f32.mxu1 %v6783_v61  ;;  %v4326_v10 = vrot.slane %v6783_v61, 4  ;;  %v5932_v11 = vpop.f32.mrb[35].mxu1  ;;  %v3037_v25 = vmul.f32 0.5, %v2958_v2  ;;  %v4327_v58 = vrot.slane %v6813_v19, 4  ;;  %v3039_v39 = vmul.f32 0.5, %v3029_v7 }
 0x7f6   : > { %3137 = vmatmul.mubr.f32.vlgmr.msra.gmra.mrb[36].mxu1 %v6780_v60  ;;  %v3038_v15 = vmul.f32 0.5, %v2960_v8  ;;  %v4328_v16 = vrot.slane %v6792_v6, 4  ;;  %v3375_v55 = vrot.slane %v6783_v61, 1  ;;  %v4643_v2 = vrot.slane %v6783_v61, 5  ;;  %v5726_v5 = vld [vmem:[%s7257_s6 + $0x98] sm:$0xff] }
 0x7f7   : > { %6018 = vmatpush1.bf16.xpose.msra.mxu1 %v6017_v3  ;;  %3206 = vmatprep.mubr.f32.mxu1 %v6792_v6  ;;  %v6842_v31 = vadd.f32 %v3037_v25, %v6706_v1  ;;  %v5790_v1 = vld [vmem:[%s7257_s6 + $0x238] sm:$0xff]  ;;  %v6886_v46 = vadd.f32 %v3039_v39, %v6698_v62  ;;  %v5799_v62 = vld [vmem:[%s7257_s6 + $0x280] sm:$0x3]  ;;  %v5733_v7 = vld [vmem:[%s7257_s6 + $0xd0] sm:$0x3]  ;;  %v3374_v9 = vrot.slane %v6780_v60, 1 }
 0x7f8   : > { %4410 = vmatprep.mubr.f32.mxu0 %v4326_v10  ;;  %6020 = vmatprep.subr.bf16.mxu1 %v6019_v52  ;;  %v6822_v23 = vadd.f32 %v3038_v15, %v6701_v63  ;;  %v3061_v63 = vld [vmem:[%s7257_s6 + $0x68] sm:$0x3]  ;;  %v6091_v41 = vpack.c.bf16 %v5797_v37, %v5790_v1  ;;  %v6095_v59 = vpack.c.bf16 %v5799_v62, %v5792_v54  ;;  %v5723_v3 = vld [vmem:[%s7257_s6 + $0x80] sm:$0xff]  ;;  %v5798_v50 = vld [vmem:[%s7257_s6 + $0x278] sm:$0x3]  ;;  %v3377_v12 = vrot.slane %v6792_v6, 1 }
 0x7f9   : > { %4411 = vmatmul.mubr.f32.vlgmr.msra.gmra.mrb[36].mxu0 %v4325_v13  ;;  %v6024_v32 = vpack.c.bf16 %v3061_v63, %v3054_v27  ;;  %v4329_v40 = vrot.slane %v6842_v31, 4  ;;  %v4331_v57 = vrot.slane %v6886_v46, 4  ;;  %v6033_v8 = vpack.c.bf16 %v5730_v4, %v5723_v3  ;;  %v5791_v52 = vld [vmem:[%s7257_s6 + $0x240] sm:$0xff]  ;;  %v5794_v11 = vld [vmem:[%s7257_s6 + $0x258] sm:$0xff] }
 0x7fa   : > { %6082 = vmatpush1.bf16.xpose.msra.mxu0 %v6081_v53  ;;  %4480 = vmatprep.mubr.f32.mxu0 %v4328_v16  ;;  %v4330_v26 = vrot.slane %v6822_v23, 4  ;;  %v6035_v10 = vpack.c.bf16 %v5733_v7, %v5726_v5  ;;  %v5801_v53 = vld [vmem:[%s7257_s6 + $0x290] sm:$0x3]  ;;  %v6097_v13 = vpack.c.bf16 %v5798_v50, %v5791_v52  ;;  %v4645_v16 = vrot.slane %v6792_v6, 5  ;;  %v5727_v63 = vld [vmem:[%s7257_s6 + $0xa0] sm:$0xff] }
 0x7fb   : > { %6084 = vmatprep.subr.bf16.mxu0 %v6083_v14  ;;  %v4642_v14 = vrot.slane %v6780_v60, 5  ;;  %v6099_v15 = vpack.c.bf16 %v5801_v53, %v5794_v11  ;;  %v3379_v25 = vrot.slane %v6822_v23, 1  ;;  %v4647_v27 = vrot.slane %v6822_v23, 5  ;;  %v5814_v39 = vld [vmem:[%s7257_s6 + $0x2e0] sm:$0x3]  ;;  %v5740_v5 = vld [vmem:[%s7257_s6 + $0xf0] sm:$0xff] }
 0x7fc   : > { %v6040_v33 = vpack.c.bf16 %v5734_v29, %v5727_v63  ;;  %v3378_v1 = vrot.slane %v6842_v31, 1  ;;  %v3380_v54 = vrot.slane %v6886_v46, 1  ;;  %v4960_v4 = vrot.slane %v6783_v61, 6  ;;  %v5747_v7 = vld [vmem:[%s7257_s6 + $0x128] sm:$0x3] }
 0x7fd   : > { %v5750_v52 = vld [vmem:[%s7257_s6 + $0x140] sm:$0x3]  ;;  %v6049_v50 = vpack.c.bf16 %v5747_v7, %v5740_v5  ;;  %v3691_v11 = vrot.slane %v6780_v60, 2  ;;  %v4961_v63 = vrot.slane %v6813_v19, 6  ;;  %v4964_v29 = vrot.slane %v6822_v23, 6 }
 0x7fe   : > { %3207 = vmatmul.mubr.f32.vlgmr.msra.gmra.mrb[36].mxu1 %v6813_v19  ;;  %v4963_v43 = vrot.slane %v6842_v31, 6  ;;  %v5277_v7 = vrot.slane %v6783_v61, 7 }
 0x7ff   : > { %6022 = vmatpush1.bf16.xpose.msra.mxu1 %v6021_v20  ;;  %3276 = vmatprep.mubr.f32.mxu1 %v6822_v23  ;;  %v6037_v20 = vpack.c.bf16 %v5732_v18, %v5725_v17  ;;  %v4962_v18 = vrot.slane %v6792_v6, 6 }
 0x800   : > { %6023 = vmatprep.subr.bf16.mxu1 %v6375_v28 }
 0x801   : > { %4481 = vmatmul.mubr.f32.vlgmr.msra.gmra.mrb[36].mxu0 %v4327_v58  ;;  %v6101_v58 = vpack.c.bf16 %v5800_v22, %v5793_v21  ;;  %v5749_v21 = vld [vmem:[%s7257_s6 + $0x138] sm:$0x3] }
 0x802   : > { %6086 = vmatpush1.bf16.xpose.msra.mxu0 %v6085_v24  ;;  %4550 = vmatprep.mubr.f32.mxu0 %v4330_v26  ;;  %v3376_v24 = vrot.slane %v6813_v19, 1  ;;  %v4644_v26 = vrot.slane %v6813_v19, 5 }
 0x803   : > { %6087 = vmatprep.subr.bf16.mxu0 %v6375_v28 }
 0x806   : > { %3277 = vmatmul.mubr.f32.vlgmr.msra.gmra.mrb[36].mxu1 %v6842_v31 }
 0x807   : > { %6026 = vmatpush3.bf16.xpose.msk.msra.mxu1 %vm6853_vm7, %v6024_v32  ;;  %5937 = vmatprep.mubr.msk.f32.mxu1 %vm6376_vm4, %v6372_v0  ;;  %v5746_v32 = vld [vmem:[%s7257_s6 + $0x120] sm:$0x3] }
 0x808   : > { %6028 = vmatprep.subr.bf16.mxu1 %v6027_v36  ;;  %v5802_v36 = vld [vmem:[%s7257_s6 + $0x298] sm:$0x3]  ;;  %v6043_v37 = vpack.c.bf16 %v5746_v32, %v5739_v30  ;;  %v5744_v30 = vld [vmem:[%s7257_s6 + $0x110] sm:$0xff]  ;;  %v5751_v32 = vld [vmem:[%s7257_s6 + $0x148] sm:$0x3] }
 0x809   : > { %4551 = vmatmul.mubr.f32.vlgmr.msra.gmra.mrb[36].mxu0 %v4329_v40  ;;  %v6104_v40 = vpack.c.bf16 %v5802_v36, %v5795_v34  ;;  %v5763_v34 = vld [vmem:[%s7257_s6 + $0x190] sm:$0x3]  ;;  %v6056_v36 = vpack.c.bf16 %v5751_v32, %v5744_v30  ;;  %v5768_v30 = vld [vmem:[%s7257_s6 + $0x1b8] sm:$0x3] }
 0x80a   : > { %6090 = vmatpush3.bf16.xpose.msk.msra.mxu0 %vm6853_vm7, %v6088_v38  ;;  %5965 = vmatprep.mubr.msk.f32.mxu0 %vm6376_vm4, %v6372_v0  ;;  %v5807_v38 = vld [vmem:[%s7257_s6 + $0x2a8] sm:$0xff] }
 0x80b   : > { %6092 = vmatprep.subr.bf16.mxu0 %v6091_v41  ;;  %v4646_v41 = vrot.slane %v6842_v31, 5  ;;  %v6107_v42 = vpack.c.bf16 %v5814_v39, %v5807_v38  ;;  %v3695_v38 = vrot.slane %v6842_v31, 2 }
 0x80e   : > { %5938 = vmatmul.mubr.msk.f32.vlgmr.msra.gmra.mrb[36].mxu1 %vm3062_vm6, %v6886_v46 }
 0x80f   : > { %6030 = vmatpush1.bf16.xpose.msra.mxu1 %v6029_v47  ;;  %3459 = vmatprep.mubr.f32.mxu1 %v3375_v55  ;;  %v5748_v47 = vld [vmem:[%s7257_s6 + $0x130] sm:$0x3]  ;;  %v5809_v55 = vld [vmem:[%s7257_s6 + $0x2b8] sm:$0xff] }
 0x810   : > { %6032 = vmatprep.subr.bf16.mxu1 %v6031_v51  ;;  %v5813_v51 = vld [vmem:[%s7257_s6 + $0x2d8] sm:$0x3]  ;;  %v6047_v62 = vpack.c.bf16 %v5748_v47, %v5741_v45  ;;  %v5755_v45 = vld [vmem:[%s7257_s6 + $0x150] sm:$0xff]  ;;  %v5762_v47 = vld [vmem:[%s7257_s6 + $0x188] sm:$0x3] }
 0x811   : > { %5966 = vmatmul.mubr.msk.f32.vlgmr.msra.gmra.mrb[36].mxu0 %vm3062_vm6, %v4331_v57  ;;  %v3692_v57 = vrot.slane %v6783_v61, 2 }
 0x812   : > { %6094 = vmatpush1.bf16.xpose.msra.mxu0 %v6093_v56  ;;  %4727 = vmatprep.mubr.f32.mxu0 %v4643_v2  ;;  %v5816_v56 = vld [vmem:[%s7257_s6 + $0x2f0] sm:$0x3]  ;;  %v4648_v2 = vrot.slane %v6886_v46, 5 }
 0x813   : > { %6096 = vmatprep.subr.bf16.mxu0 %v6095_v59  ;;  %v6109_v59 = vpack.c.bf16 %v5813_v51, %v5806_v49  ;;  %v6111_v3 = vpack.c.bf16 %v5816_v56, %v5809_v55  ;;  %v5765_v49 = vld [vmem:[%s7257_s6 + $0x1a0] sm:$0x3]  ;;  %v6061_v51 = vpack.c.bf16 %v5762_v47, %v5755_v45  ;;  %v3697_v55 = vrot.slane %v6886_v46, 2 }
 0x816   : > { %3460 = vmatmul.mubr.f32.vlgmr.msra.gmra.mrb[36].mxu1 %v3374_v9  ;;  %v5808_v9 = vld [vmem:[%s7257_s6 + $0x2b0] sm:$0xff] }
 0x817   : > { %6034 = vmatpush1.bf16.xpose.msra.mxu1 %v6033_v8  ;;  %3529 = vmatprep.mubr.f32.mxu1 %v3377_v12  ;;  %v5743_v8 = vld [vmem:[%s7257_s6 + $0x108] sm:$0xff] }
 0x818   : > { %6036 = vmatprep.subr.bf16.mxu1 %v6035_v10  ;;  %v5815_v10 = vld [vmem:[%s7257_s6 + $0x2e8] sm:$0x3]  ;;  %v6051_v53 = vpack.c.bf16 %v5750_v52, %v5743_v8  ;;  %v5757_v8 = vld [vmem:[%s7257_s6 + $0x160] sm:$0xff]  ;;  %v5764_v52 = vld [vmem:[%s7257_s6 + $0x198] sm:$0x3] }
 0x819   : > { %4728 = vmatmul.mubr.f32.vlgmr.msra.gmra.mrb[36].mxu0 %v4642_v14  ;;  %v5811_v12 = vld [vmem:[%s7257_s6 + $0x2c8] sm:$0xff]  ;;  %v3694_v14 = vrot.slane %v6792_v6, 2 }
 0x81a   : > { %6098 = vmatpush1.bf16.xpose.msra.mxu0 %v6097_v13  ;;  %4797 = vmatprep.mubr.f32.mxu0 %v4645_v16  ;;  %v5818_v13 = vld [vmem:[%s7257_s6 + $0x300] sm:$0x3]  ;;  %v4959_v16 = vrot.slane %v6780_v60, 6 }
 0x81b   : > { %6100 = vmatprep.subr.bf16.mxu0 %v6099_v15  ;;  %v6113_v15 = vpack.c.bf16 %v5815_v10, %v5808_v9  ;;  %v6115_v17 = vpack.c.bf16 %v5818_v13, %v5811_v12  ;;  %v5767_v9 = vld [vmem:[%s7257_s6 + $0x1b0] sm:$0x3]  ;;  %v5825_v10 = vld [vmem:[%s7257_s6 + $0x320] sm:$0xff]  ;;  %v5828_v13 = vld [vmem:[%s7257_s6 + $0x338] sm:$0xff] }
 0x81e   : > { %3530 = vmatmul.mubr.f32.vlgmr.msra.gmra.mrb[36].mxu1 %v3376_v24  ;;  %v5810_v24 = vld [vmem:[%s7257_s6 + $0x2c0] sm:$0xff] }
 0x81f   : > { %6038 = vmatpush1.bf16.xpose.msra.mxu1 %v6037_v20  ;;  %3599 = vmatprep.mubr.f32.mxu1 %v3379_v25  ;;  %v5742_v20 = vld [vmem:[%s7257_s6 + $0x100] sm:$0xff]  ;;  %v5817_v25 = vld [vmem:[%s7257_s6 + $0x2f8] sm:$0x3] }
 0x820   : > { %6039 = vmatprep.subr.bf16.mxu1 %v6375_v28  ;;  %v6053_v22 = vpack.c.bf16 %v5749_v21, %v5742_v20  ;;  %v5279_v20 = vrot.slane %v6792_v6, 7  ;;  %v5759_v21 = vld [vmem:[%s7257_s6 + $0x170] sm:$0xff] }
 0x821   : > { %4798 = vmatmul.mubr.f32.vlgmr.msra.gmra.mrb[36].mxu0 %v4644_v26  ;;  %v3696_v26 = vrot.slane %v6822_v23, 2 }
 0x822   : > { %6102 = vmatpush1.bf16.xpose.msra.mxu0 %v6101_v58  ;;  %4867 = vmatprep.mubr.f32.mxu0 %v4647_v27  ;;  %v3693_v58 = vrot.slane %v6813_v19, 2  ;;  %v6117_v27 = vpack.c.bf16 %v5817_v25, %v5810_v24  ;;  %v4010_v25 = vrot.slane %v6813_v19, 3 }
 0x823   : > { %6103 = vmatprep.subr.bf16.mxu0 %v6375_v28 }
 0x826   : > { %3600 = vmatmul.mubr.f32.vlgmr.msra.gmra.mrb[36].mxu1 %v3378_v1  ;;  %v5812_v1 = vld [vmem:[%s7257_s6 + $0x2d0] sm:$0xff] }
 0x827   : > { %6042 = vmatpush3.bf16.xpose.msk.msra.mxu1 %vm6853_vm7, %v6040_v33  ;;  %5944 = vmatprep.mubr.msk.f32.mxu1 %vm6376_vm4, %v6372_v0  ;;  %v5756_v33 = vld [vmem:[%s7257_s6 + $0x158] sm:$0xff] }
 0x828   : > { %6044 = vmatprep.subr.bf16.mxu1 %v6043_v37  ;;  %v5819_v37 = vld [vmem:[%s7257_s6 + $0x308] sm:$0x3]  ;;  %v6059_v39 = vpack.c.bf16 %v5763_v34, %v5756_v33  ;;  %v4012_v33 = vrot.slane %v6842_v31, 3 }
 0x829   : > { %4868 = vmatmul.mubr.f32.vlgmr.msra.gmra.mrb[36].mxu0 %v4646_v41  ;;  %v5831_v41 = vld [vmem:[%s7257_s6 + $0x350] sm:$0x3] }
 0x82a   : > { %6106 = vmatpush3.bf16.xpose.msk.msra.mxu0 %vm6853_vm7, %v6104_v40  ;;  %5972 = vmatprep.mubr.msk.f32.mxu0 %vm6376_vm4, %v6372_v0  ;;  %v5824_v40 = vld [vmem:[%s7257_s6 + $0x318] sm:$0xff] }
 0x82b   : > { %6108 = vmatprep.subr.bf16.mxu0 %v6107_v42  ;;  %v6120_v42 = vpack.c.bf16 %v5819_v37, %v5812_v1  ;;  %v6123_v44 = vpack.c.bf16 %v5831_v41, %v5824_v40  ;;  %v5282_v1 = vrot.slane %v6886_v46, 7 }
 0x82e   : > { %5945 = vmatmul.mubr.msk.f32.vlgmr.msra.gmra.mrb[36].mxu1 %vm3062_vm6, %v3380_v54  ;;  %v5823_v54 = vld [vmem:[%s7257_s6 + $0x310] sm:$0xff] }
 0x82f   : > { %6046 = vmatpush1.bf16.xpose.msra.mxu1 %v6045_v48  ;;  %3776 = vmatprep.mubr.f32.mxu1 %v3692_v57  ;;  %v5758_v48 = vld [vmem:[%s7257_s6 + $0x168] sm:$0xff] }
 0x830   : > { %6048 = vmatprep.subr.bf16.mxu1 %v6047_v62  ;;  %v5830_v62 = vld [vmem:[%s7257_s6 + $0x348] sm:$0x3]  ;;  %v6063_v56 = vpack.c.bf16 %v5765_v49, %v5758_v48 }
 0x831   : > { %5973 = vmatmul.mubr.msk.f32.vlgmr.msra.gmra.mrb[36].mxu0 %vm3062_vm6, %v4648_v2  ;;  %v5826_v57 = vld [vmem:[%s7257_s6 + $0x328] sm:$0xff]  ;;  %v4009_v2 = vrot.slane %v6783_v61, 3  ;;  %v6065_v61 = vpack.c.bf16 %v5764_v52, %v5757_v8 }
 0x832   : > { %6110 = vmatpush1.bf16.xpose.msra.mxu0 %v6109_v59  ;;  %5044 = vmatprep.mubr.f32.mxu0 %v4960_v4  ;;  %v5833_v59 = vld [vmem:[%s7257_s6 + $0x360] sm:$0x3]  ;;  %v4965_v4 = vrot.slane %v6886_v46, 6 }
 0x833   : > { %6112 = vmatprep.subr.bf16.mxu0 %v6111_v3  ;;  %v6125_v3 = vpack.c.bf16 %v5830_v62, %v5823_v54  ;;  %v6127_v5 = vpack.c.bf16 %v5833_v59, %v5826_v57 }
 0x836   : > { %3777 = vmatmul.mubr.f32.vlgmr.msra.gmra.mrb[36].mxu1 %v3691_v11  ;;  %v5832_v11 = vld [vmem:[%s7257_s6 + $0x358] sm:$0x3] }
 0x837   : > { %6050 = vmatpush1.bf16.xpose.msra.mxu1 %v6049_v50  ;;  %3846 = vmatprep.mubr.f32.mxu1 %v3694_v14  ;;  %v5760_v50 = vld [vmem:[%s7257_s6 + $0x178] sm:$0xff]  ;;  %v5835_v14 = vld [vmem:[%s7257_s6 + $0x370] sm:$0x3] }
 0x838   : > { %6052 = vmatprep.subr.bf16.mxu1 %v6051_v53  ;;  %v4008_v53 = vrot.slane %v6780_v60, 3  ;;  %v6067_v12 = vpack.c.bf16 %v5767_v9, %v5760_v50 }
 0x839   : > { %5045 = vmatmul.mubr.f32.vlgmr.msra.gmra.mrb[36].mxu0 %v4959_v16  ;;  %v6129_v16 = vpack.c.bf16 %v5832_v11, %v5825_v10 }
 0x83a   : > { %6114 = vmatpush1.bf16.xpose.msra.mxu0 %v6113_v15  ;;  %5114 = vmatprep.mubr.f32.mxu0 %v4962_v18  ;;  %v4011_v15 = vrot.slane %v6792_v6, 3  ;;  %v6131_v18 = vpack.c.bf16 %v5835_v14, %v5828_v13  ;;  %v5834_v6 = vld [vmem:[%s7257_s6 + $0x368] sm:$0x3] }
 0x83b   : > { %6116 = vmatprep.subr.bf16.mxu0 %v6115_v17  ;;  %v5276_v17 = vrot.slane %v6780_v60, 7  ;;  %v5827_v60 = vld [vmem:[%s7257_s6 + $0x330] sm:$0xff] }
 0x83e   : > { %3847 = vmatmul.mubr.f32.vlgmr.msra.gmra.mrb[36].mxu1 %v3693_v58  ;;  %v4013_v58 = vrot.slane %v6822_v23, 3 }
 0x83f   : > { %6054 = vmatpush1.bf16.xpose.msra.mxu1 %v6053_v22  ;;  %3916 = vmatprep.mubr.f32.mxu1 %v3696_v26  ;;  %v5766_v22 = vld [vmem:[%s7257_s6 + $0x1a8] sm:$0x3]  ;;  %v6133_v26 = vpack.c.bf16 %v5834_v6, %v5827_v60 }
 0x840   : > { %6055 = vmatprep.subr.bf16.mxu1 %v6375_v28  ;;  %v6069_v24 = vpack.c.bf16 %v5766_v22, %v5759_v21 }
 0x841   : > { %5115 = vmatmul.mubr.f32.vlgmr.msra.gmra.mrb[36].mxu0 %v4961_v63  ;;  %v5281_v63 = vrot.slane %v6822_v23, 7  ;;  %v5836_v23 = vld [vmem:[%s7257_s6 + $0x378] sm:$0x3] }
 0x842   : > { %6118 = vmatpush1.bf16.xpose.msra.mxu0 %v6117_v27  ;;  %5184 = vmatprep.mubr.f32.mxu0 %v4964_v29  ;;  %v5278_v27 = vrot.slane %v6813_v19, 7  ;;  %v5761_v29 = vld [vmem:[%s7257_s6 + $0x180] sm:$0xff] }
 0x843   : > { %6119 = vmatprep.subr.bf16.mxu0 %v6375_v28  ;;  %v6072_v32 = vpack.c.bf16 %v5768_v30, %v5761_v29  ;;  %v5829_v19 = vld [vmem:[%s7257_s6 + $0x340] sm:$0xff] }
 0x844   : > { %v6136_v34 = vpack.c.bf16 %v5836_v23, %v5829_v19 }
 0x846   : > { %3917 = vmatmul.mubr.f32.vlgmr.msra.gmra.mrb[36].mxu1 %v3695_v38 }
 0x847   : > { %6058 = vmatpush3.bf16.xpose.msk.msra.mxu1 %vm6853_vm7, %v6056_v36  ;;  %5951 = vmatprep.mubr.msk.f32.mxu1 %vm6376_vm4, %v6372_v0  ;;  %v5280_v36 = vrot.slane %v6842_v31, 7  ;;  %v3047_v31 = vld [vmem:[%s7258_s7] sm:$0x1] }
 0x848   : > { %6060 = vmatprep.subr.bf16.mxu1 %v6059_v39 }
 0x849   : > { %5185 = vmatmul.mubr.f32.vlgmr.msra.gmra.mrb[36].mxu0 %v4963_v43 }
 0x84a   : > { %6122 = vmatpush3.bf16.xpose.msk.msra.mxu0 %vm6853_vm7, %v6120_v42  ;;  %5979 = vmatprep.mubr.msk.f32.mxu0 %vm6376_vm4, %v6372_v0 }
 0x84b   : > { %6124 = vmatprep.subr.bf16.mxu0 %v6123_v44 }
 0x84e   : > { %5952 = vmatmul.mubr.msk.f32.vlgmr.msra.gmra.mrb[36].mxu1 %vm3062_vm6, %v3697_v55 }
 0x84f   : > { %6062 = vmatpush1.bf16.xpose.msra.mxu1 %v6061_v51  ;;  %4093 = vmatprep.mubr.f32.mxu1 %v4009_v2 }
 0x850   : > { %6064 = vmatprep.subr.bf16.mxu1 %v6063_v56 }
 0x851   : > { %5980 = vmatmul.mubr.msk.f32.vlgmr.msra.gmra.mrb[36].mxu0 %vm3062_vm6, %v4965_v4 }
 0x852   : > { %6126 = vmatpush1.bf16.xpose.msra.mxu0 %v6125_v3  ;;  %5361 = vmatprep.mubr.f32.mxu0 %v5277_v7 }
 0x853   : > { %6128 = vmatprep.subr.bf16.mxu0 %v6127_v5 }
 0x856   : > { %4094 = vmatmul.mubr.f32.vlgmr.msra.gmra.mrb[36].mxu1 %v4008_v53 }
 0x857   : > { %6066 = vmatpush1.bf16.xpose.msra.mxu1 %v6065_v61  ;;  %4163 = vmatprep.mubr.f32.mxu1 %v4011_v15 }
 0x858   : > { %6068 = vmatprep.subr.bf16.mxu1 %v6067_v12 }
 0x859   : > { %5362 = vmatmul.mubr.f32.vlgmr.msra.gmra.mrb[36].mxu0 %v5276_v17 }
 0x85a   : > { %6130 = vmatpush1.bf16.xpose.msra.mxu0 %v6129_v16  ;;  %5431 = vmatprep.mubr.f32.mxu0 %v5279_v20 }
 0x85b   : > { %6132 = vmatprep.subr.bf16.mxu0 %v6131_v18 }
 0x85e   : > { %4164 = vmatmul.mubr.f32.vlgmr.msra.gmra.mrb[36].mxu1 %v4010_v25 }
 0x85f   : > { %6070 = vmatpush1.bf16.xpose.msra.mxu1 %v6069_v24  ;;  %4233 = vmatprep.mubr.f32.mxu1 %v4013_v58 }
 0x860   : > { %6071 = vmatprep.subr.bf16.mxu1 %v6375_v28 }
 0x861   : > { %5432 = vmatmul.mubr.f32.vlgmr.msra.gmra.mrb[36].mxu0 %v5278_v27 }
 0x862   : > { %6134 = vmatpush1.bf16.xpose.msra.mxu0 %v6133_v26  ;;  %5501 = vmatprep.mubr.f32.mxu0 %v5281_v63 }
 0x863   : > { %6135 = vmatprep.subr.bf16.mxu0 %v6375_v28  ;;  %v4014_v28 = vrot.slane %v6886_v46, 3 }
 0x866   : > { %4234 = vmatmul.mubr.f32.vlgmr.msra.gmra.mrb[36].mxu1 %v4012_v33 }
 0x867   : > { %6074 = vmatpush3.bf16.xpose.msk.msra.mxu1 %vm6853_vm7, %v6072_v32  ;;  %5958 = vmatprep.mubr.msk.f32.mxu1 %vm6376_vm4, %v6372_v0 }
 0x869   : > { %5502 = vmatmul.mubr.f32.vlgmr.msra.gmra.mrb[36].mxu0 %v5280_v36 }
 0x86a   : > { %6138 = vmatpush3.bf16.xpose.msk.msra.mxu0 %vm6853_vm7, %v6136_v34  ;;  %5986 = vmatprep.mubr.msk.f32.mxu0 %vm6376_vm4, %v6372_v0 }
 0x86e   : > { %5959 = vmatmul.mubr.msk.f32.vlgmr.msra.gmra.mrb[36].mxu1 %vm3062_vm6, %v4014_v28 }
 0x871   : > { %5987 = vmatmul.mubr.msk.f32.vlgmr.msra.gmra.mrb[36].mxu0 %vm3062_vm6, %v5282_v1 }
 0x941   : > { %v4305_v37 = vpop.f32.mrb[36].mxu1 }
 0x942   : > { %v6139_v38 = vadd.f32 %v4305_v37, %v3047_v31  ;;  %v5960_v39 = vpop.f32.mrb[37].mxu1 }
 0x944   : > { %v5573_v35 = vpop.f32.mrb[36].mxu0 }
 0x945   : > { %v6140_v40 = vadd.f32 %v6139_v38, %v5573_v35  ;;  %v5988_v0 = vpop.f32.mrb[37].mxu0 }
 0x947   : > { %v5579_v41 = vsel %vm5578_vm8, %v6140_v40, -inf }
 0x948   : > { %5580 = vmax.xlane.f32.xlu1 %v5579_v41 }
 0x9d5   : > { %v5581_v42 = vpop.xlane.xlu1 %5580 }
 0x9d6   : > { %v5582_v46 = vsub.f32 %v6140_v40, %v5581_v42 }
 0x9d8   : > { %v5583_v43 = vmul.f32 1.442695, %v5582_v46 }
 0x9da   : > { %6304 = vpow2.f32 %v5583_v43 }
 0x9e4   : > { %v6305_v44 = vpop.eup %6304 }
 0x9e5   : > { %v5585_v45 = vsel %vm5578_vm8, %v6305_v44, 0.0 }
 0x9e6   : > { %5586 = vadd.xlane.f32.xlu0 %v5585_v45 }
 0xa73   : > { %v5587_v47 = vpop.xlane.xlu0 %5586 }
 0xa74   : > { %6306 = vlog2.f32 %v5587_v47 }
 0xa7e   : > { %v6307_v48 = vpop.eup %6306 }
 0xa7f   : > { %v5589_v49 = vmul.f32 0.6931472, %v6307_v48 }
 0xa81   : > { %v5590_v51 = vadd.f32 %v5589_v49, %v5581_v42 }
 0xa83   : > { %v5591_v54 = vsub.f32 %v6140_v40, %v5590_v51 }
 0xa85   : > { %5592 = vst.msk [vmem:[%s297_s18] sm:$0x1] %vm5578_vm8, %v5591_v54 }
 0xa86   : > { %6321 = shalt.err (!%p6318_p3)
}
 0xa87   : > { %s6322_s10 = scalar_lea.hbm %s7208_s22, 16  ;;  %s6326_s17 = scalar_lea.hbm %s7259_s8, 32 }
 0xa88   : > { %p6323_p4 = scmp.ne.s32.totalorder %s7208_s22, %s6322_s10  ;;  %p6327_p9 = scmp.lt.u32.totalorder %s7208_s22, %s7259_s8 }
 0xa89   : > { %p6328_p10 = scmp.lt.u32.totalorder %s6326_s17, %s6322_s10  ;;  %p6330_p12 = scmp.lt.u32.totalorder %s6322_s10, %s7208_s22 }
 0xa8a   : > { %p6324_p7 = pnand %p6323_p4, %p6461_p5 }
 0xa8b   : > { %p6329_p11 = por %p6328_p10, %p6327_p9 }
 0xa8c   : > { %p6325_p8 = pneg %p6324_p7 }
 0xa8d   : > { %p6331_p13 = por %p6330_p12, %p6329_p11 }
 0xa8f   : > { %p6332_p0 = pnand %p6331_p13, %p6325_p8 }
 0xa91   : > { %6335 = shalt.err (!%p6332_p0)
}
 0xa92   : > { %6202 = dma.vmem_to_hbm [thread:$0]  (%p6461_p5), %s7210_s19, 16, %s7208_s22, %s5594_s23  }
 0xa93 PF: > { %p6208_p1 = scmp.ge.s32.totalorder %s6370_s30, 2  ;;  %s5618_s21 = sand.u32 1, %s6358_s27  }
 0xa94   : > { %s5619_s24 = scalar_lea.sflag [#allocation3], %s5618_s21 }
 0xa95   : > { %p6205_p2 = pnand %p6208_p1, %p6465_p6 }
 0xa97   : > { %6353 = dma.done.wait (!%p6205_p2), %s5619_s24, 16  }
 0xa98   : > { %6355 = vsyncadd (!%p6205_p2), %s5619_s24, 4294967280  ;;  %p18_p3 = scmp.ge.s32.totalorder %s6448_s11, 4   ;;  %s7266_s27 = smov %s6362_s28 }
 0xa99   : > { %s7267_s28 = smov %s6366_s29  ;;  %s7268_s29 = smov %s6459_s14 }
 0xa9a   : > { %s7269_s30 = smov %s6448_s11  ;;  %20 = sbr.rel (!%p18_p3) target bundleno = 3 (0x3), region = 103 }
 0xaa1   :  { %5623 = vsyncpa [#allocation3], 1 }
 0xaa2   :  { %5625 = vsyncpa [#allocation3 + $0x1], 1 }

</bundles_post_ra>
